<compile_context>
chip_gen: v6e
topology: v6e:2x2x1
jax: 0.10.0
libtpu: 0.0.40
codegen_flags: <defaults>
</compile_context>

<pallas_src>
import functools

import jax
import jax.numpy as jnp
import numpy as np
from jax.experimental import pallas as pl
from jax.experimental.pallas import tpu as pltpu


# ----------------------------------------------------------------------------
# Phase 1: GRU recurrence (grid-less, sequential over time)
# ----------------------------------------------------------------------------
def gru_kernel(y_ref, w_ih_ref, w_hh_ref, b_gi_ref, b_hn_ref, enc_ref,
               *, seq_len, batch, gate_w):
    S, Bp, G = seq_len, batch, gate_w

    # Hoisted input projection: one (S*Bp, D) x (D, 3G) matmul, off the
    # serial critical path.  r/u hh-biases are already folded into b_gi.
    gi_all = jnp.dot(y_ref[...], w_ih_ref[...],
                     preferred_element_type=jnp.float32) + b_gi_ref[...]

    w_hh = w_hh_ref[...]        # (G, 3G), rows [H:G] are zero
    b_hn = b_hn_ref[...]        # (1, G),  lanes [H:G] are zero

    h = jnp.zeros((Bp, G), dtype=jnp.float32)
    # Fully unrolled recurrence (S static) -> static, sublane-aligned slices
    # and full scheduler visibility across steps.  For very long S switch to
    # lax.fori_loop(..., unroll=k).
    for t in range(S):
        gi = gi_all[t * Bp:(t + 1) * Bp, :]                       # (Bp, 3G)
        gh = jnp.dot(h, w_hh, preferred_element_type=jnp.float32)  # (Bp, 3G)
        r = jax.nn.sigmoid(gi[:, :G] + gh[:, :G])
        u = jax.nn.sigmoid(gi[:, G:2 * G] + gh[:, G:2 * G])
        n = jnp.tanh(gi[:, 2 * G:] + r * (gh[:, 2 * G:] + b_hn))
        h = (1.0 - u) * n + u * h
        enc_ref[t * Bp:(t + 1) * Bp, :] = h


# ----------------------------------------------------------------------------
# Phase 2: posterior + split/softmax + fused decoder  (token-parallel grid)
# ----------------------------------------------------------------------------
def posterior_decoder_kernel(enc_ref, w_post_ref, b_post_ref, wc_ref, out_ref,
                             *, z_dim, x_dim, input_dim, inv_temp, slab_pad):
    zx = z_dim + x_dim
    D = input_dim
    rows = enc_ref.shape[0]

    enc = enc_ref[...]                                            # (T, G)
    post = jnp.dot(enc, w_post_ref[...],
                   preferred_element_type=jnp.float32) + b_post_ref[...]
    mu = post[:, :zx]

    # split: z -> softmax (mean decoding), x -> passthrough
    z_logits = mu[:, :z_dim] * inv_temp
    x = mu[:, z_dim:zx]
    m = jnp.max(z_logits, axis=-1, keepdims=True)
    e = jnp.exp(z_logits - m)
    z = e * pl.reciprocal(jnp.sum(e, axis=-1, keepdims=True), approx=True)

    # decoder: block-diagonal weights + biases fused into one matmul via a
    # ones column -> cx[:, i*D:(i+1)*D] == linear_maps[i](x_i)
    x_aug = jnp.concatenate([x, jnp.ones((rows, 1), jnp.float32)], axis=-1)
    cx = jnp.dot(x_aug, wc_ref[...], preferred_element_type=jnp.float32)
    y_recon = jnp.zeros((rows, D), dtype=jnp.float32)
    for i in range(z_dim):                     # z_dim is a Python constant
        y_recon = y_recon + z[:, i:i + 1] * cx[:, i * D:(i + 1) * D]
    # TODO(synk): neuron_bias is None in this config; add it here otherwise.
    y_recon = jax.nn.softplus(y_recon)

    # single lane-dense slab store:  [post | z | x | y_recon | zero pad]
    parts = [post, z, x, y_recon]
    if slab_pad > 0:
        parts.append(jnp.zeros((rows, slab_pad), jnp.float32))
    out_ref[...] = jnp.concatenate(parts, axis=-1)


# ----------------------------------------------------------------------------
# Parameter construction (deterministic, PyTorch-default-style uniform init)
# ----------------------------------------------------------------------------
def init_params(key, input_dim, hidden_dim, dim_x_z):
    z_dim = len(dim_x_z)
    x_dim = sum(dim_x_z)
    zx = z_dim + x_dim
    out_dim = zx * (zx + 1)

    keys = jax.random.split(key, 8 + 2 * z_dim)
    k_gru = 1.0 / np.sqrt(hidden_dim)
    u = lambda k, shape, bound: jax.random.uniform(
        k, shape, jnp.float32, -bound, bound)

    params = {
        "w_ih": u(keys[0], (3 * hidden_dim, input_dim), k_gru),
        "w_hh": u(keys[1], (3 * hidden_dim, hidden_dim), k_gru),
        "b_ih": u(keys[2], (3 * hidden_dim,), k_gru),
        "b_hh": u(keys[3], (3 * hidden_dim,), k_gru),
        "w_post": u(keys[4], (out_dim, hidden_dim), k_gru),
        "b_post": u(keys[5], (out_dim,), k_gru),
        "lin_w": [],
        "lin_b": [],
    }
    for i, di in enumerate(dim_x_z):
        kb = 1.0 / np.sqrt(di)
        params["lin_w"].append(u(keys[6 + 2 * i], (input_dim, di), kb))
        params["lin_b"].append(u(keys[7 + 2 * i], (input_dim,), kb))
    return params


# ----------------------------------------------------------------------------
# Host-side weight packing (lane-aligned gates, folded biases, fused decoder)
# ----------------------------------------------------------------------------
def pack_gru(params, input_dim, hidden_dim, gate_w):
    H, G = hidden_dim, gate_w
    w_ih = np.asarray(params["w_ih"])     # (3H, D) gate order r, z, n
    w_hh = np.asarray(params["w_hh"])     # (3H, H)
    b_ih = np.asarray(params["b_ih"])
    b_hh = np.asarray(params["b_hh"])

    w_ih_p = np.zeros((input_dim, 3 * G), np.float32)
    w_hh_p = np.zeros((G, 3 * G), np.float32)
    b_gi = np.zeros((1, 3 * G), np.float32)
    b_hn = np.zeros((1, G), np.float32)
    for g in range(3):
        w_ih_p[:, g * G:g * G + H] = w_ih[g * H:(g + 1) * H, :].T
        w_hh_p[:H, g * G:g * G + H] = w_hh[g * H:(g + 1) * H, :].T
        if g < 2:   # r, z gates: hh bias folds into the hoisted input bias
            b_gi[0, g * G:g * G + H] = b_ih[g * H:(g + 1) * H] + b_hh[g * H:(g + 1) * H]
        else:       # n gate: b_hn stays inside r * (W_hn h + b_hn)
            b_gi[0, g * G:g * G + H] = b_ih[g * H:(g + 1) * H]
            b_hn[0, :H] = b_hh[g * H:(g + 1) * H]
    return (jnp.asarray(w_ih_p), jnp.asarray(w_hh_p),
            jnp.asarray(b_gi), jnp.asarray(b_hn))


def pack_posterior(params, hidden_dim, gate_w):
    w_post = np.asarray(params["w_post"])        # (out_dim, H)
    out_dim = w_post.shape[0]
    w_post_p = np.zeros((gate_w, out_dim), np.float32)
    w_post_p[:hidden_dim, :] = w_post.T
    b_post = np.asarray(params["b_post"]).reshape(1, -1).astype(np.float32)
    return jnp.asarray(w_post_p), jnp.asarray(b_post)


def fuse_linear_maps(params, input_dim, dim_x_z):
    """Block-diagonal decoder weight (x_dim+1, z_dim*D); last row = biases."""
    z_dim = len(dim_x_z)
    x_dim = sum(dim_x_z)
    ends = np.cumsum(dim_x_z)
    starts = np.concatenate([[0], ends[:-1]])
    wc = np.zeros((x_dim + 1, z_dim * input_dim), np.float32)
    for i, (s, e) in enumerate(zip(starts, ends)):
        wc[s:e, i * input_dim:(i + 1) * input_dim] = np.asarray(
            params["lin_w"][i]).T
        wc[x_dim, i * input_dim:(i + 1) * input_dim] = np.asarray(
            params["lin_b"][i])
    return jnp.asarray(wc)


# ----------------------------------------------------------------------------
# Wrapper
# ----------------------------------------------------------------------------
def vae_forward(y, params, dim_x_z, hidden_dim, softmax_temp=1.0):
    B, S, D = y.shape
    z_dim = len(dim_x_z)
    x_dim = sum(dim_x_z)
    zx = z_dim + x_dim
    post_w = zx * (zx + 1)

    G = ((hidden_dim + 127) // 128) * 128        # gate slab / padded hidden
    Bp = ((B + 7) // 8) * 8                      # fill sublanes
    SB = S * Bp                                  # padded token count

    w_ih_p, w_hh_p, b_gi, b_hn = pack_gru(params, D, hidden_dim, G)
    w_post_p, b_post = pack_posterior(params, hidden_dim, G)
    wc = fuse_linear_maps(params, D, dim_x_z)

    # batch-pad, time-major flatten: row index = t*Bp + b
    y_p = jnp.pad(y.astype(jnp.float32), ((0, Bp - B), (0, 0), (0, 0)))
    y_flat = jnp.transpose(y_p, (1, 0, 2)).reshape(SB, D)

    vmem = pl.BlockSpec(memory_space=pltpu.MemorySpace.VMEM)

    # ---- phase 1: sequential GRU, enc emitted as a lane-dense (SB, G) slab
    enc = pl.pallas_call(
        functools.partial(gru_kernel, seq_len=S, batch=Bp, gate_w=G),
        out_shape=jax.ShapeDtypeStruct((SB, G), jnp.float32),
        in_specs=[vmem] * 5,
        out_specs=vmem,
    )(y_flat, w_ih_p, w_hh_p, b_gi, b_hn)

    # ---- phase 2: token-parallel posterior + decoder, single output slab
    slab_used = post_w + zx + D
    slab_w = ((slab_used + 127) // 128) * 128
    slab_pad = slab_w - slab_used
    tile = min(256, SB)
    while SB % tile != 0:
        tile //= 2
    grid = (SB // tile,)

    slab = pl.pallas_call(
        functools.partial(posterior_decoder_kernel, z_dim=z_dim, x_dim=x_dim,
                          input_dim=D, inv_temp=1.0 / float(softmax_temp),
                          slab_pad=slab_pad),
        out_shape=jax.ShapeDtypeStruct((SB, slab_w), jnp.float32),
        grid=grid,
        in_specs=[
            pl.BlockSpec((tile, G), lambda i: (i, 0)),
            pl.BlockSpec((G, post_w), lambda i: (0, 0)),
            pl.BlockSpec((1, post_w), lambda i: (0, 0)),
            pl.BlockSpec((x_dim + 1, z_dim * D), lambda i: (0, 0)),
        ],
        out_specs=pl.BlockSpec((tile, slab_w), lambda i: (i, 0)),
        compiler_params=pltpu.CompilerParams(
            dimension_semantics=("parallel",)),
    )(enc, w_post_p, b_post, wc)

    # ---- unpack slab back to batch-first outputs
    slab_bs = jnp.transpose(slab.reshape(S, Bp, slab_w), (1, 0, 2))[:B]
    post = slab_bs[..., :post_w]
    mu = post[..., :zx]
    A = post[..., zx:post_w].reshape(B, S, zx, zx)
    z = slab_bs[..., post_w:post_w + z_dim]
    x = slab_bs[..., post_w + z_dim:post_w + zx]
    y_recon = slab_bs[..., post_w + zx:post_w + zx + D]
    return {
        "y_recon": y_recon,
        "x_samples": x,
        "z_samples": z,
        "combined_mean": mu,
        "combined_A": A,
    }


# ----------------------------------------------------------------------------
# Pure-JAX reference (mirrors the PyTorch forward, mean-decoding branch)
# ----------------------------------------------------------------------------
def vae_forward_ref(y, params, dim_x_z, hidden_dim, softmax_temp=1.0):
    B, S, D = y.shape
    z_dim = len(dim_x_z)
    x_dim = sum(dim_x_z)
    zx = z_dim + x_dim
    H = hidden_dim

    h = jnp.zeros((B, H), jnp.float32)
    encs = []
    for t in range(S):
        x_t = y[:, t, :]
        gi = x_t @ params["w_ih"].T + params["b_ih"]
        gh = h @ params["w_hh"].T + params["b_hh"]
        r = jax.nn.sigmoid(gi[:, :H] + gh[:, :H])
        u = jax.nn.sigmoid(gi[:, H:2 * H] + gh[:, H:2 * H])
        n = jnp.tanh(gi[:, 2 * H:] + r * gh[:, 2 * H:])
        h = (1.0 - u) * n + u * h
        encs.append(h)
    enc = jnp.stack(encs, axis=1)                                  # (B, S, H)
    post = enc @ params["w_post"].T + params["b_post"]
    mu = post[..., :zx]
    A = post[..., zx:].reshape(B, S, zx, zx)
    z = jax.nn.softmax(mu[..., :z_dim] / softmax_temp, axis=-1)
    x = mu[..., z_dim:]
    ends = np.cumsum(dim_x_z)
    starts = np.concatenate([[0], ends[:-1]])
    cx_list = [x[..., s:e] @ params["lin_w"][i].T + params["lin_b"][i]
               for i, (s, e) in enumerate(zip(starts, ends))]
    Cx = jnp.stack(cx_list, axis=-1)                               # (B,S,D,z)
    y_recon = jax.nn.softplus(jnp.sum(Cx * z[:, :, None, :], axis=3))
    return {"y_recon": y_recon, "x_samples": x, "z_samples": z,
            "combined_mean": mu, "combined_A": A}


# ----------------------------------------------------------------------------
if __name__ == "__main__":
    dim_x_z = [2, 3]          # z_dim=2, x_dim=5, posterior width 7*8 = 56
    input_dim = 4             # number of neurons
    hidden_dim = 32
    softmax_temp = 1.0
    B, S = 2, 8

    key = jax.random.PRNGKey(0)
    k_params, k_data = jax.random.split(key)
    params = init_params(k_params, input_dim, hidden_dim, dim_x_z)
    y = jax.random.normal(k_data, (B, S, input_dim), jnp.float32)

    out = vae_forward(y, params, dim_x_z, hidden_dim, softmax_temp)
    out = jax.tree_util.tree_map(jax.block_until_ready, out)

    ref = vae_forward_ref(y, params, dim_x_z, hidden_dim, softmax_temp)
    tight = dict(rtol=2e-3, atol=2e-3)
    loose = dict(rtol=1e-2, atol=1e-2)   # softmax uses approx EUP reciprocal
    for name, tol in (("combined_mean", tight), ("combined_A", tight),
                      ("x_samples", tight), ("z_samples", loose),
                      ("y_recon", loose)):
        np.testing.assert_allclose(np.asarray(out[name]),
                                   np.asarray(ref[name]), **tol)

    print("KERNEL_OK")
</pallas_src>

<mosaic_0001>
module attributes {stable_mosaic.version = 11 : i64} {
  func.func @gru_kernel(%arg0: memref<64x4xf32, #tpu.memory_space<vmem>>, %arg1: memref<4x384xf32, #tpu.memory_space<vmem>>, %arg2: memref<128x384xf32, #tpu.memory_space<vmem>>, %arg3: memref<1x384xf32, #tpu.memory_space<vmem>>, %arg4: memref<1x128xf32, #tpu.memory_space<vmem>>, %arg5: memref<64x128xf32, #tpu.memory_space<vmem>>) attributes {dimension_semantics = [], scalar_prefetch = 0 : i64, scratch_operands = 0 : i64, tpu.core_type = #tpu.core_type<tc>} {
    %c0 = arith.constant 0 : index
    %c0_0 = arith.constant 0 : index
    %0 = vector.load %arg0[%c0, %c0_0] : memref<64x4xf32, #tpu.memory_space<vmem>>, vector<64x4xf32>
    %c0_1 = arith.constant 0 : index
    %c0_2 = arith.constant 0 : index
    %1 = vector.load %arg1[%c0_1, %c0_2] : memref<4x384xf32, #tpu.memory_space<vmem>>, vector<4x384xf32>
    %cst = arith.constant dense<0.000000e+00> : vector<64x384xf32>
    %2 = tpu.matmul %0, %1, %cst {dimension_numbers = #tpu.dot_dimension_numbers<[1], [0], [0], [1], [0, 0, 1, 1], [], []>} : vector<64x4xf32>, vector<4x384xf32>, vector<64x384xf32> -> vector<64x384xf32>
    %c0_3 = arith.constant 0 : index
    %c0_4 = arith.constant 0 : index
    %3 = vector.load %arg3[%c0_3, %c0_4] : memref<1x384xf32, #tpu.memory_space<vmem>>, vector<1x384xf32>
    %4 = vector.broadcast %3 : vector<1x384xf32> to vector<64x384xf32>
    %5 = arith.addf %2, %4 : vector<64x384xf32>
    %c0_5 = arith.constant 0 : index
    %c0_6 = arith.constant 0 : index
    %6 = vector.load %arg2[%c0_5, %c0_6] : memref<128x384xf32, #tpu.memory_space<vmem>>, vector<128x384xf32>
    %c0_7 = arith.constant 0 : index
    %c0_8 = arith.constant 0 : index
    %7 = vector.load %arg4[%c0_7, %c0_8] : memref<1x128xf32, #tpu.memory_space<vmem>>, vector<1x128xf32>
    %cst_9 = arith.constant 0.000000e+00 : f32
    %8 = vector.broadcast %cst_9 : f32 to vector<8x128xf32>
    %9 = vector.extract_strided_slice %5 {offsets = [0, 0], sizes = [8, 384], strides = [1, 1]} : vector<64x384xf32> to vector<8x384xf32>
    %cst_10 = arith.constant dense<0.000000e+00> : vector<8x384xf32>
    %10 = tpu.matmul %8, %6, %cst_10 {dimension_numbers = #tpu.dot_dimension_numbers<[1], [0], [0], [1], [0, 0, 1, 1], [], []>} : vector<8x128xf32>, vector<128x384xf32>, vector<8x384xf32> -> vector<8x384xf32>
    %11 = vector.extract_strided_slice %9 {offsets = [0, 0], sizes = [8, 128], strides = [1, 1]} : vector<8x384xf32> to vector<8x128xf32>
    %12 = vector.extract_strided_slice %10 {offsets = [0, 0], sizes = [8, 128], strides = [1, 1]} : vector<8x384xf32> to vector<8x128xf32>
    %13 = arith.addf %11, %12 : vector<8x128xf32>
    %14 = arith.negf %13 : vector<8x128xf32>
    %15 = math.exp %14 : vector<8x128xf32>
    %cst_11 = arith.constant 1.000000e+00 : f32
    %16 = vector.broadcast %cst_11 : f32 to vector<8x128xf32>
    %17 = arith.addf %16, %15 : vector<8x128xf32>
    %18 = arith.divf %16, %17 : vector<8x128xf32>
    %19 = vector.extract_strided_slice %9 {offsets = [0, 128], sizes = [8, 128], strides = [1, 1]} : vector<8x384xf32> to vector<8x128xf32>
    %20 = vector.extract_strided_slice %10 {offsets = [0, 128], sizes = [8, 128], strides = [1, 1]} : vector<8x384xf32> to vector<8x128xf32>
    %21 = arith.addf %19, %20 : vector<8x128xf32>
    %22 = arith.negf %21 : vector<8x128xf32>
    %23 = math.exp %22 : vector<8x128xf32>
    %cst_12 = arith.constant 1.000000e+00 : f32
    %24 = vector.broadcast %cst_12 : f32 to vector<8x128xf32>
    %25 = arith.addf %24, %23 : vector<8x128xf32>
    %26 = arith.divf %24, %25 : vector<8x128xf32>
    %27 = vector.extract_strided_slice %9 {offsets = [0, 256], sizes = [8, 128], strides = [1, 1]} : vector<8x384xf32> to vector<8x128xf32>
    %28 = vector.extract_strided_slice %10 {offsets = [0, 256], sizes = [8, 128], strides = [1, 1]} : vector<8x384xf32> to vector<8x128xf32>
    %29 = vector.broadcast %7 : vector<1x128xf32> to vector<8x128xf32>
    %30 = arith.addf %28, %29 : vector<8x128xf32>
    %31 = arith.mulf %18, %30 : vector<8x128xf32>
    %32 = arith.addf %27, %31 : vector<8x128xf32>
    %33 = math.tanh %32 : vector<8x128xf32>
    %cst_13 = arith.constant 1.000000e+00 : f32
    %34 = vector.broadcast %cst_13 : f32 to vector<8x128xf32>
    %35 = arith.subf %34, %26 : vector<8x128xf32>
    %36 = arith.mulf %35, %33 : vector<8x128xf32>
    %37 = arith.mulf %26, %8 : vector<8x128xf32>
    %38 = arith.addf %36, %37 : vector<8x128xf32>
    %c0_14 = arith.constant 0 : index
    %c0_15 = arith.constant 0 : index
    %39 = vector.load %arg5[%c0_14, %c0_15] : memref<64x128xf32, #tpu.memory_space<vmem>>, vector<8x128xf32>
    tpu.vector_store %arg5[%c0_14, %c0_15], %38 {strides = array<i32>} : memref<64x128xf32, #tpu.memory_space<vmem>>, vector<8x128xf32>,
    %40 = vector.extract_strided_slice %5 {offsets = [8, 0], sizes = [8, 384], strides = [1, 1]} : vector<64x384xf32> to vector<8x384xf32>
    %cst_16 = arith.constant dense<0.000000e+00> : vector<8x384xf32>
    %41 = tpu.matmul %38, %6, %cst_16 {dimension_numbers = #tpu.dot_dimension_numbers<[1], [0], [0], [1], [0, 0, 1, 1], [], []>} : vector<8x128xf32>, vector<128x384xf32>, vector<8x384xf32> -> vector<8x384xf32>
    %42 = vector.extract_strided_slice %40 {offsets = [0, 0], sizes = [8, 128], strides = [1, 1]} : vector<8x384xf32> to vector<8x128xf32>
    %43 = vector.extract_strided_slice %41 {offsets = [0, 0], sizes = [8, 128], strides = [1, 1]} : vector<8x384xf32> to vector<8x128xf32>
    %44 = arith.addf %42, %43 : vector<8x128xf32>
    %45 = arith.negf %44 : vector<8x128xf32>
    %46 = math.exp %45 : vector<8x128xf32>
    %cst_17 = arith.constant 1.000000e+00 : f32
    %47 = vector.broadcast %cst_17 : f32 to vector<8x128xf32>
    %48 = arith.addf %47, %46 : vector<8x128xf32>
    %49 = arith.divf %47, %48 : vector<8x128xf32>
    %50 = vector.extract_strided_slice %40 {offsets = [0, 128], sizes = [8, 128], strides = [1, 1]} : vector<8x384xf32> to vector<8x128xf32>
    %51 = vector.extract_strided_slice %41 {offsets = [0, 128], sizes = [8, 128], strides = [1, 1]} : vector<8x384xf32> to vector<8x128xf32>
    %52 = arith.addf %50, %51 : vector<8x128xf32>
    %53 = arith.negf %52 : vector<8x128xf32>
    %54 = math.exp %53 : vector<8x128xf32>
    %cst_18 = arith.constant 1.000000e+00 : f32
    %55 = vector.broadcast %cst_18 : f32 to vector<8x128xf32>
    %56 = arith.addf %55, %54 : vector<8x128xf32>
    %57 = arith.divf %55, %56 : vector<8x128xf32>
    %58 = vector.extract_strided_slice %40 {offsets = [0, 256], sizes = [8, 128], strides = [1, 1]} : vector<8x384xf32> to vector<8x128xf32>
    %59 = vector.extract_strided_slice %41 {offsets = [0, 256], sizes = [8, 128], strides = [1, 1]} : vector<8x384xf32> to vector<8x128xf32>
    %60 = vector.broadcast %7 : vector<1x128xf32> to vector<8x128xf32>
    %61 = arith.addf %59, %60 : vector<8x128xf32>
    %62 = arith.mulf %49, %61 : vector<8x128xf32>
    %63 = arith.addf %58, %62 : vector<8x128xf32>
    %64 = math.tanh %63 : vector<8x128xf32>
    %cst_19 = arith.constant 1.000000e+00 : f32
    %65 = vector.broadcast %cst_19 : f32 to vector<8x128xf32>
    %66 = arith.subf %65, %57 : vector<8x128xf32>
    %67 = arith.mulf %66, %64 : vector<8x128xf32>
    %68 = arith.mulf %57, %38 : vector<8x128xf32>
    %69 = arith.addf %67, %68 : vector<8x128xf32>
    %c8 = arith.constant 8 : index
    %c0_20 = arith.constant 0 : index
    %70 = vector.load %arg5[%c8, %c0_20] : memref<64x128xf32, #tpu.memory_space<vmem>>, vector<8x128xf32>
    tpu.vector_store %arg5[%c8, %c0_20], %69 {strides = array<i32>} : memref<64x128xf32, #tpu.memory_space<vmem>>, vector<8x128xf32>,
    %71 = vector.extract_strided_slice %5 {offsets = [16, 0], sizes = [8, 384], strides = [1, 1]} : vector<64x384xf32> to vector<8x384xf32>
    %cst_21 = arith.constant dense<0.000000e+00> : vector<8x384xf32>
    %72 = tpu.matmul %69, %6, %cst_21 {dimension_numbers = #tpu.dot_dimension_numbers<[1], [0], [0], [1], [0, 0, 1, 1], [], []>} : vector<8x128xf32>, vector<128x384xf32>, vector<8x384xf32> -> vector<8x384xf32>
    %73 = vector.extract_strided_slice %71 {offsets = [0, 0], sizes = [8, 128], strides = [1, 1]} : vector<8x384xf32> to vector<8x128xf32>
    %74 = vector.extract_strided_slice %72 {offsets = [0, 0], sizes = [8, 128], strides = [1, 1]} : vector<8x384xf32> to vector<8x128xf32>
    %75 = arith.addf %73, %74 : vector<8x128xf32>
    %76 = arith.negf %75 : vector<8x128xf32>
    %77 = math.exp %76 : vector<8x128xf32>
    %cst_22 = arith.constant 1.000000e+00 : f32
    %78 = vector.broadcast %cst_22 : f32 to vector<8x128xf32>
    %79 = arith.addf %78, %77 : vector<8x128xf32>
    %80 = arith.divf %78, %79 : vector<8x128xf32>
    %81 = vector.extract_strided_slice %71 {offsets = [0, 128], sizes = [8, 128], strides = [1, 1]} : vector<8x384xf32> to vector<8x128xf32>
    %82 = vector.extract_strided_slice %72 {offsets = [0, 128], sizes = [8, 128], strides = [1, 1]} : vector<8x384xf32> to vector<8x128xf32>
    %83 = arith.addf %81, %82 : vector<8x128xf32>
    %84 = arith.negf %83 : vector<8x128xf32>
    %85 = math.exp %84 : vector<8x128xf32>
    %cst_23 = arith.constant 1.000000e+00 : f32
    %86 = vector.broadcast %cst_23 : f32 to vector<8x128xf32>
    %87 = arith.addf %86, %85 : vector<8x128xf32>
    %88 = arith.divf %86, %87 : vector<8x128xf32>
    %89 = vector.extract_strided_slice %71 {offsets = [0, 256], sizes = [8, 128], strides = [1, 1]} : vector<8x384xf32> to vector<8x128xf32>
    %90 = vector.extract_strided_slice %72 {offsets = [0, 256], sizes = [8, 128], strides = [1, 1]} : vector<8x384xf32> to vector<8x128xf32>
    %91 = vector.broadcast %7 : vector<1x128xf32> to vector<8x128xf32>
    %92 = arith.addf %90, %91 : vector<8x128xf32>
    %93 = arith.mulf %80, %92 : vector<8x128xf32>
    %94 = arith.addf %89, %93 : vector<8x128xf32>
    %95 = math.tanh %94 : vector<8x128xf32>
    %cst_24 = arith.constant 1.000000e+00 : f32
    %96 = vector.broadcast %cst_24 : f32 to vector<8x128xf32>
    %97 = arith.subf %96, %88 : vector<8x128xf32>
    %98 = arith.mulf %97, %95 : vector<8x128xf32>
    %99 = arith.mulf %88, %69 : vector<8x128xf32>
    %100 = arith.addf %98, %99 : vector<8x128xf32>
    %c16 = arith.constant 16 : index
    %c0_25 = arith.constant 0 : index
    %101 = vector.load %arg5[%c16, %c0_25] : memref<64x128xf32, #tpu.memory_space<vmem>>, vector<8x128xf32>
    tpu.vector_store %arg5[%c16, %c0_25], %100 {strides = array<i32>} : memref<64x128xf32, #tpu.memory_space<vmem>>, vector<8x128xf32>,
    %102 = vector.extract_strided_slice %5 {offsets = [24, 0], sizes = [8, 384], strides = [1, 1]} : vector<64x384xf32> to vector<8x384xf32>
    %cst_26 = arith.constant dense<0.000000e+00> : vector<8x384xf32>
    %103 = tpu.matmul %100, %6, %cst_26 {dimension_numbers = #tpu.dot_dimension_numbers<[1], [0], [0], [1], [0, 0, 1, 1], [], []>} : vector<8x128xf32>, vector<128x384xf32>, vector<8x384xf32> -> vector<8x384xf32>
    %104 = vector.extract_strided_slice %102 {offsets = [0, 0], sizes = [8, 128], strides = [1, 1]} : vector<8x384xf32> to vector<8x128xf32>
    %105 = vector.extract_strided_slice %103 {offsets = [0, 0], sizes = [8, 128], strides = [1, 1]} : vector<8x384xf32> to vector<8x128xf32>
    %106 = arith.addf %104, %105 : vector<8x128xf32>
    %107 = arith.negf %106 : vector<8x128xf32>
    %108 = math.exp %107 : vector<8x128xf32>
    %cst_27 = arith.constant 1.000000e+00 : f32
    %109 = vector.broadcast %cst_27 : f32 to vector<8x128xf32>
    %110 = arith.addf %109, %108 : vector<8x128xf32>
    %111 = arith.divf %109, %110 : vector<8x128xf32>
    %112 = vector.extract_strided_slice %102 {offsets = [0, 128], sizes = [8, 128], strides = [1, 1]} : vector<8x384xf32> to vector<8x128xf32>
    %113 = vector.extract_strided_slice %103 {offsets = [0, 128], sizes = [8, 128], strides = [1, 1]} : vector<8x384xf32> to vector<8x128xf32>
    %114 = arith.addf %112, %113 : vector<8x128xf32>
    %115 = arith.negf %114 : vector<8x128xf32>
    %116 = math.exp %115 : vector<8x128xf32>
    %cst_28 = arith.constant 1.000000e+00 : f32
    %117 = vector.broadcast %cst_28 : f32 to vector<8x128xf32>
    %118 = arith.addf %117, %116 : vector<8x128xf32>
    %119 = arith.divf %117, %118 : vector<8x128xf32>
    %120 = vector.extract_strided_slice %102 {offsets = [0, 256], sizes = [8, 128], strides = [1, 1]} : vector<8x384xf32> to vector<8x128xf32>
    %121 = vector.extract_strided_slice %103 {offsets = [0, 256], sizes = [8, 128], strides = [1, 1]} : vector<8x384xf32> to vector<8x128xf32>
    %122 = vector.broadcast %7 : vector<1x128xf32> to vector<8x128xf32>
    %123 = arith.addf %121, %122 : vector<8x128xf32>
    %124 = arith.mulf %111, %123 : vector<8x128xf32>
    %125 = arith.addf %120, %124 : vector<8x128xf32>
    %126 = math.tanh %125 : vector<8x128xf32>
    %cst_29 = arith.constant 1.000000e+00 : f32
    %127 = vector.broadcast %cst_29 : f32 to vector<8x128xf32>
    %128 = arith.subf %127, %119 : vector<8x128xf32>
    %129 = arith.mulf %128, %126 : vector<8x128xf32>
    %130 = arith.mulf %119, %100 : vector<8x128xf32>
    %131 = arith.addf %129, %130 : vector<8x128xf32>
    %c24 = arith.constant 24 : index
    %c0_30 = arith.constant 0 : index
    %132 = vector.load %arg5[%c24, %c0_30] : memref<64x128xf32, #tpu.memory_space<vmem>>, vector<8x128xf32>
    tpu.vector_store %arg5[%c24, %c0_30], %131 {strides = array<i32>} : memref<64x128xf32, #tpu.memory_space<vmem>>, vector<8x128xf32>,
    %133 = vector.extract_strided_slice %5 {offsets = [32, 0], sizes = [8, 384], strides = [1, 1]} : vector<64x384xf32> to vector<8x384xf32>
    %cst_31 = arith.constant dense<0.000000e+00> : vector<8x384xf32>
    %134 = tpu.matmul %131, %6, %cst_31 {dimension_numbers = #tpu.dot_dimension_numbers<[1], [0], [0], [1], [0, 0, 1, 1], [], []>} : vector<8x128xf32>, vector<128x384xf32>, vector<8x384xf32> -> vector<8x384xf32>
    %135 = vector.extract_strided_slice %133 {offsets = [0, 0], sizes = [8, 128], strides = [1, 1]} : vector<8x384xf32> to vector<8x128xf32>
    %136 = vector.extract_strided_slice %134 {offsets = [0, 0], sizes = [8, 128], strides = [1, 1]} : vector<8x384xf32> to vector<8x128xf32>
    %137 = arith.addf %135, %136 : vector<8x128xf32>
    %138 = arith.negf %137 : vector<8x128xf32>
    %139 = math.exp %138 : vector<8x128xf32>
    %cst_32 = arith.constant 1.000000e+00 : f32
    %140 = vector.broadcast %cst_32 : f32 to vector<8x128xf32>
    %141 = arith.addf %140, %139 : vector<8x128xf32>
    %142 = arith.divf %140, %141 : vector<8x128xf32>
    %143 = vector.extract_strided_slice %133 {offsets = [0, 128], sizes = [8, 128], strides = [1, 1]} : vector<8x384xf32> to vector<8x128xf32>
    %144 = vector.extract_strided_slice %134 {offsets = [0, 128], sizes = [8, 128], strides = [1, 1]} : vector<8x384xf32> to vector<8x128xf32>
    %145 = arith.addf %143, %144 : vector<8x128xf32>
    %146 = arith.negf %145 : vector<8x128xf32>
    %147 = math.exp %146 : vector<8x128xf32>
    %cst_33 = arith.constant 1.000000e+00 : f32
    %148 = vector.broadcast %cst_33 : f32 to vector<8x128xf32>
    %149 = arith.addf %148, %147 : vector<8x128xf32>
    %150 = arith.divf %148, %149 : vector<8x128xf32>
    %151 = vector.extract_strided_slice %133 {offsets = [0, 256], sizes = [8, 128], strides = [1, 1]} : vector<8x384xf32> to vector<8x128xf32>
    %152 = vector.extract_strided_slice %134 {offsets = [0, 256], sizes = [8, 128], strides = [1, 1]} : vector<8x384xf32> to vector<8x128xf32>
    %153 = vector.broadcast %7 : vector<1x128xf32> to vector<8x128xf32>
    %154 = arith.addf %152, %153 : vector<8x128xf32>
    %155 = arith.mulf %142, %154 : vector<8x128xf32>
    %156 = arith.addf %151, %155 : vector<8x128xf32>
    %157 = math.tanh %156 : vector<8x128xf32>
    %cst_34 = arith.constant 1.000000e+00 : f32
    %158 = vector.broadcast %cst_34 : f32 to vector<8x128xf32>
    %159 = arith.subf %158, %150 : vector<8x128xf32>
    %160 = arith.mulf %159, %157 : vector<8x128xf32>
    %161 = arith.mulf %150, %131 : vector<8x128xf32>
    %162 = arith.addf %160, %161 : vector<8x128xf32>
    %c32 = arith.constant 32 : index
    %c0_35 = arith.constant 0 : index
    %163 = vector.load %arg5[%c32, %c0_35] : memref<64x128xf32, #tpu.memory_space<vmem>>, vector<8x128xf32>
    tpu.vector_store %arg5[%c32, %c0_35], %162 {strides = array<i32>} : memref<64x128xf32, #tpu.memory_space<vmem>>, vector<8x128xf32>,
    %164 = vector.extract_strided_slice %5 {offsets = [40, 0], sizes = [8, 384], strides = [1, 1]} : vector<64x384xf32> to vector<8x384xf32>
    %cst_36 = arith.constant dense<0.000000e+00> : vector<8x384xf32>
    %165 = tpu.matmul %162, %6, %cst_36 {dimension_numbers = #tpu.dot_dimension_numbers<[1], [0], [0], [1], [0, 0, 1, 1], [], []>} : vector<8x128xf32>, vector<128x384xf32>, vector<8x384xf32> -> vector<8x384xf32>
    %166 = vector.extract_strided_slice %164 {offsets = [0, 0], sizes = [8, 128], strides = [1, 1]} : vector<8x384xf32> to vector<8x128xf32>
    %167 = vector.extract_strided_slice %165 {offsets = [0, 0], sizes = [8, 128], strides = [1, 1]} : vector<8x384xf32> to vector<8x128xf32>
    %168 = arith.addf %166, %167 : vector<8x128xf32>
    %169 = arith.negf %168 : vector<8x128xf32>
    %170 = math.exp %169 : vector<8x128xf32>
    %cst_37 = arith.constant 1.000000e+00 : f32
    %171 = vector.broadcast %cst_37 : f32 to vector<8x128xf32>
    %172 = arith.addf %171, %170 : vector<8x128xf32>
    %173 = arith.divf %171, %172 : vector<8x128xf32>
    %174 = vector.extract_strided_slice %164 {offsets = [0, 128], sizes = [8, 128], strides = [1, 1]} : vector<8x384xf32> to vector<8x128xf32>
    %175 = vector.extract_strided_slice %165 {offsets = [0, 128], sizes = [8, 128], strides = [1, 1]} : vector<8x384xf32> to vector<8x128xf32>
    %176 = arith.addf %174, %175 : vector<8x128xf32>
    %177 = arith.negf %176 : vector<8x128xf32>
    %178 = math.exp %177 : vector<8x128xf32>
    %cst_38 = arith.constant 1.000000e+00 : f32
    %179 = vector.broadcast %cst_38 : f32 to vector<8x128xf32>
    %180 = arith.addf %179, %178 : vector<8x128xf32>
    %181 = arith.divf %179, %180 : vector<8x128xf32>
    %182 = vector.extract_strided_slice %164 {offsets = [0, 256], sizes = [8, 128], strides = [1, 1]} : vector<8x384xf32> to vector<8x128xf32>
    %183 = vector.extract_strided_slice %165 {offsets = [0, 256], sizes = [8, 128], strides = [1, 1]} : vector<8x384xf32> to vector<8x128xf32>
    %184 = vector.broadcast %7 : vector<1x128xf32> to vector<8x128xf32>
    %185 = arith.addf %183, %184 : vector<8x128xf32>
    %186 = arith.mulf %173, %185 : vector<8x128xf32>
    %187 = arith.addf %182, %186 : vector<8x128xf32>
    %188 = math.tanh %187 : vector<8x128xf32>
    %cst_39 = arith.constant 1.000000e+00 : f32
    %189 = vector.broadcast %cst_39 : f32 to vector<8x128xf32>
    %190 = arith.subf %189, %181 : vector<8x128xf32>
    %191 = arith.mulf %190, %188 : vector<8x128xf32>
    %192 = arith.mulf %181, %162 : vector<8x128xf32>
    %193 = arith.addf %191, %192 : vector<8x128xf32>
    %c40 = arith.constant 40 : index
    %c0_40 = arith.constant 0 : index
    %194 = vector.load %arg5[%c40, %c0_40] : memref<64x128xf32, #tpu.memory_space<vmem>>, vector<8x128xf32>
    tpu.vector_store %arg5[%c40, %c0_40], %193 {strides = array<i32>} : memref<64x128xf32, #tpu.memory_space<vmem>>, vector<8x128xf32>,
    %195 = vector.extract_strided_slice %5 {offsets = [48, 0], sizes = [8, 384], strides = [1, 1]} : vector<64x384xf32> to vector<8x384xf32>
    %cst_41 = arith.constant dense<0.000000e+00> : vector<8x384xf32>
    %196 = tpu.matmul %193, %6, %cst_41 {dimension_numbers = #tpu.dot_dimension_numbers<[1], [0], [0], [1], [0, 0, 1, 1], [], []>} : vector<8x128xf32>, vector<128x384xf32>, vector<8x384xf32> -> vector<8x384xf32>
    %197 = vector.extract_strided_slice %195 {offsets = [0, 0], sizes = [8, 128], strides = [1, 1]} : vector<8x384xf32> to vector<8x128xf32>
    %198 = vector.extract_strided_slice %196 {offsets = [0, 0], sizes = [8, 128], strides = [1, 1]} : vector<8x384xf32> to vector<8x128xf32>
    %199 = arith.addf %197, %198 : vector<8x128xf32>
    %200 = arith.negf %199 : vector<8x128xf32>
    %201 = math.exp %200 : vector<8x128xf32>
    %cst_42 = arith.constant 1.000000e+00 : f32
    %202 = vector.broadcast %cst_42 : f32 to vector<8x128xf32>
    %203 = arith.addf %202, %201 : vector<8x128xf32>
    %204 = arith.divf %202, %203 : vector<8x128xf32>
    %205 = vector.extract_strided_slice %195 {offsets = [0, 128], sizes = [8, 128], strides = [1, 1]} : vector<8x384xf32> to vector<8x128xf32>
    %206 = vector.extract_strided_slice %196 {offsets = [0, 128], sizes = [8, 128], strides = [1, 1]} : vector<8x384xf32> to vector<8x128xf32>
    %207 = arith.addf %205, %206 : vector<8x128xf32>
    %208 = arith.negf %207 : vector<8x128xf32>
    %209 = math.exp %208 : vector<8x128xf32>
    %cst_43 = arith.constant 1.000000e+00 : f32
    %210 = vector.broadcast %cst_43 : f32 to vector<8x128xf32>
    %211 = arith.addf %210, %209 : vector<8x128xf32>
    %212 = arith.divf %210, %211 : vector<8x128xf32>
    %213 = vector.extract_strided_slice %195 {offsets = [0, 256], sizes = [8, 128], strides = [1, 1]} : vector<8x384xf32> to vector<8x128xf32>
    %214 = vector.extract_strided_slice %196 {offsets = [0, 256], sizes = [8, 128], strides = [1, 1]} : vector<8x384xf32> to vector<8x128xf32>
    %215 = vector.broadcast %7 : vector<1x128xf32> to vector<8x128xf32>
    %216 = arith.addf %214, %215 : vector<8x128xf32>
    %217 = arith.mulf %204, %216 : vector<8x128xf32>
    %218 = arith.addf %213, %217 : vector<8x128xf32>
    %219 = math.tanh %218 : vector<8x128xf32>
    %cst_44 = arith.constant 1.000000e+00 : f32
    %220 = vector.broadcast %cst_44 : f32 to vector<8x128xf32>
    %221 = arith.subf %220, %212 : vector<8x128xf32>
    %222 = arith.mulf %221, %219 : vector<8x128xf32>
    %223 = arith.mulf %212, %193 : vector<8x128xf32>
    %224 = arith.addf %222, %223 : vector<8x128xf32>
    %c48 = arith.constant 48 : index
    %c0_45 = arith.constant 0 : index
    %225 = vector.load %arg5[%c48, %c0_45] : memref<64x128xf32, #tpu.memory_space<vmem>>, vector<8x128xf32>
    tpu.vector_store %arg5[%c48, %c0_45], %224 {strides = array<i32>} : memref<64x128xf32, #tpu.memory_space<vmem>>, vector<8x128xf32>,
    %226 = vector.extract_strided_slice %5 {offsets = [56, 0], sizes = [8, 384], strides = [1, 1]} : vector<64x384xf32> to vector<8x384xf32>
    %cst_46 = arith.constant dense<0.000000e+00> : vector<8x384xf32>
    %227 = tpu.matmul %224, %6, %cst_46 {dimension_numbers = #tpu.dot_dimension_numbers<[1], [0], [0], [1], [0, 0, 1, 1], [], []>} : vector<8x128xf32>, vector<128x384xf32>, vector<8x384xf32> -> vector<8x384xf32>
    %228 = vector.extract_strided_slice %226 {offsets = [0, 0], sizes = [8, 128], strides = [1, 1]} : vector<8x384xf32> to vector<8x128xf32>
    %229 = vector.extract_strided_slice %227 {offsets = [0, 0], sizes = [8, 128], strides = [1, 1]} : vector<8x384xf32> to vector<8x128xf32>
    %230 = arith.addf %228, %229 : vector<8x128xf32>
    %231 = arith.negf %230 : vector<8x128xf32>
    %232 = math.exp %231 : vector<8x128xf32>
    %cst_47 = arith.constant 1.000000e+00 : f32
    %233 = vector.broadcast %cst_47 : f32 to vector<8x128xf32>
    %234 = arith.addf %233, %232 : vector<8x128xf32>
    %235 = arith.divf %233, %234 : vector<8x128xf32>
    %236 = vector.extract_strided_slice %226 {offsets = [0, 128], sizes = [8, 128], strides = [1, 1]} : vector<8x384xf32> to vector<8x128xf32>
    %237 = vector.extract_strided_slice %227 {offsets = [0, 128], sizes = [8, 128], strides = [1, 1]} : vector<8x384xf32> to vector<8x128xf32>
    %238 = arith.addf %236, %237 : vector<8x128xf32>
    %239 = arith.negf %238 : vector<8x128xf32>
    %240 = math.exp %239 : vector<8x128xf32>
    %cst_48 = arith.constant 1.000000e+00 : f32
    %241 = vector.broadcast %cst_48 : f32 to vector<8x128xf32>
    %242 = arith.addf %241, %240 : vector<8x128xf32>
    %243 = arith.divf %241, %242 : vector<8x128xf32>
    %244 = vector.extract_strided_slice %226 {offsets = [0, 256], sizes = [8, 128], strides = [1, 1]} : vector<8x384xf32> to vector<8x128xf32>
    %245 = vector.extract_strided_slice %227 {offsets = [0, 256], sizes = [8, 128], strides = [1, 1]} : vector<8x384xf32> to vector<8x128xf32>
    %246 = vector.broadcast %7 : vector<1x128xf32> to vector<8x128xf32>
    %247 = arith.addf %245, %246 : vector<8x128xf32>
    %248 = arith.mulf %235, %247 : vector<8x128xf32>
    %249 = arith.addf %244, %248 : vector<8x128xf32>
    %250 = math.tanh %249 : vector<8x128xf32>
    %cst_49 = arith.constant 1.000000e+00 : f32
    %251 = vector.broadcast %cst_49 : f32 to vector<8x128xf32>
    %252 = arith.subf %251, %243 : vector<8x128xf32>
    %253 = arith.mulf %252, %250 : vector<8x128xf32>
    %254 = arith.mulf %243, %224 : vector<8x128xf32>
    %255 = arith.addf %253, %254 : vector<8x128xf32>
    %c56 = arith.constant 56 : index
    %c0_50 = arith.constant 0 : index
    %256 = vector.load %arg5[%c56, %c0_50] : memref<64x128xf32, #tpu.memory_space<vmem>>, vector<8x128xf32>
    tpu.vector_store %arg5[%c56, %c0_50], %255 {strides = array<i32>} : memref<64x128xf32, #tpu.memory_space<vmem>>, vector<8x128xf32>,
    return
  }
}

</mosaic_0001>

<bundles_post_ra>
// kernel: tpu_custom_call.1
= control target key start
LH: loop header
LB: loop body
LE: loop exit
PB: predicated region body
PF: predicated region fallthrough
CT: control target
= control target key end

     0   :  { %10 = vsyncpa [#allocation3], 0  ;;  %s3320_s0 = inlined_call_operand.vmem [shape: f32[64,4], index: 0, kind: input, shape index: {}]   ;;  %s3321_s1 = inlined_call_operand.vmem [shape: f32[4,384], index: 1, kind: input, shape index: {}]   ;;  %s3322_s2 = inlined_call_operand.hbm [shape: f32[128,384], index: 2, kind: input, shape index: {}]   ;;  %s3323_s3 = inlined_call_operand.vmem [shape: f32[1,384], index: 3, kind: input, shape index: {}]   ;;  %s3324_s4 = inlined_call_operand.vmem [shape: f32[1,128], index: 4, kind: input, shape index: {}]   ;;  %s3325_s5 = inlined_call_operand.hbm [shape: f32[64,128], index: 5, kind: output, shape index: {}]  }
   0x1   :  { %11 = vsyncpa [#allocation4], 0  ;;  %s2356_s18 = smov [#allocation2]  }
   0x2   :  { %s21_s19 = sshll.u32 %s2356_s18, 4  ;;  %s22_s19 = int_to_ptr.vmem [resolvable:$true] %s21_s19 }
   0x3   :  { %s2320_s20 = scalar_lea.vmem %s22_s19, 6144  ;;  %p2325_p1 = scmp.lt.s32.totalorder %s22_s19, %s22_s19 }
   0x4   :  { %p2321_p0 = scmp.ne.s32.totalorder %s22_s19, %s2320_s20  ;;  %p2326_p2 = scmp.lt.s32.totalorder %s2320_s20, %s2320_s20 }
   0x6   :  { %p2327_p3 = por %p2326_p2, %p2325_p1 }
   0x8   :  { %p2328_p4 = pnand %p2327_p3, %p2321_p0 }
   0xa   :  { %2331 = shalt.err (!%p2328_p4)
}
   0xb   :  { %s2357_s21 = smov 384   ;;  %s2358_s22 = smov 24  }
   0xc   :  { %27 = dma.hbm_to_vmem [thread:$0]  %s3322_s2, 6144, %s22_s19, [#allocation3], %s2357_s21, %s2357_s21, %s2358_s22  }
   0xd   :  { %2352 = dma.done.wait [#allocation3], 6144  }
   0xe   :  { %2353 = vsyncadd [#allocation3], 4294961152  ;;  %v3326_v0 = vmov 0.0   ;;  %v43_v1 = vld [vmem:[%s3321_s1] sm:$0xff]  ;;  %vm90_vm0 = vcmask 1043456   ;;  %vm65_vm1 = vcmask 31744   ;;  %v47_v60 = vlaneseq }
   0xf   :  { %161 = vmatprep.mubr.f32.mxu0 %v3326_v0  ;;  %v35_v2 = vld [vmem:[%s3320_s0] sm:$0xff]  ;;  %v64_v3 = vcombine.high %v43_v1, %v43_v1  ;;  %v2405_v4 = vld [vmem:[#allocation2 + $0x170] sm:$0xff]  ;;  %v2408_v5 = vld [vmem:[#allocation2 + $0x168] sm:$0xff]  ;;  %vm2360_vm2 = vmmov 0  }
  0x10   :  { %1882 = vmatprep.mubr.msk.f32.mxu1 %vm65_vm1, %v35_v2  ;;  %3342 = vst [vmem:[#allocation8_spill] sm:$0xff] %v2405_v4  ;;  %v2411_v6 = vld [vmem:[#allocation2 + $0x158] sm:$0xff]  ;;  %v2415_v7 = vld [vmem:[#allocation2 + $0x150] sm:$0xff]  ;;  %v36_v8 = vld [vmem:[%s3320_s0 + $0x8] sm:$0xff]  ;;  %v48_v61 = vshrl.u32 %v47_v60, 7 }
  0x11   :  { %1699 = vmatprep.subr.msk.mxu0 %vm90_vm0, %v64_v3  ;;  %v2422_v9 = vld [vmem:[#allocation2 + $0x140] sm:$0xff]  ;;  %v2425_v10 = vld [vmem:[#allocation2 + $0x138] sm:$0xff]  ;;  %v2428_v11 = vld [vmem:[#allocation2 + $0x128] sm:$0xff] }
  0x12   :  { %1700 = vmatpush1.msk.msra.mxu0 %vm90_vm0, %v43_v1  ;;  %v2432_v12 = vld [vmem:[#allocation2 + $0x120] sm:$0xff]  ;;  %v2439_v13 = vld [vmem:[%s3320_s0 + $0x10] sm:$0xff]  ;;  %v2444_v15 = vld [vmem:[#allocation2 + $0x108] sm:$0xff]  ;;  %v49_v62 = vsub.s32 0, %v48_v61 }
  0x13   :  { %1701 = vmatmul.mubr.msk.f32.vlgmr.msra.gmra.mxu0 %vm65_vm1, %v35_v2  ;;  %364 = vmatprep.subr.mxu0 %v2405_v4  ;;  %v2441_v14 = vld [vmem:[#allocation2 + $0x110] sm:$0xff]  ;;  %v2447_v16 = vld [vmem:[#allocation2 + $0xf8] sm:$0xff]  ;;  %v44_v17 = vld [vmem:[%s3321_s1 + $0x8] sm:$0xf]  ;;  %v53_v2 = vsub.s32 1, %v48_v61 }
  0x14   :  { %365 = vmatpush1.msra.mxu0 %v2408_v5  ;;  %167 = vmatprep.mubr.f32.mxu0 %v3326_v0  ;;  %v2455_v18 = vld [vmem:[#allocation2 + $0xf0] sm:$0xff]  ;;  %v2462_v19 = vld [vmem:[%s3320_s0 + $0x18] sm:$0xff]  ;;  %v2464_v20 = vld [vmem:[#allocation2 + $0xe0] sm:$0xff] }
  0x15   :  { %366 = vmatprep.subr.mxu0 %v2411_v6  ;;  %v2467_v21 = vld [vmem:[#allocation2 + $0xd8] sm:$0xff]  ;;  %1880 = vmatprep.subr.msk.mxu1 %vm90_vm0, %v44_v17  ;;  %v2471_v22 = vld [vmem:[#allocation2 + $0xc8] sm:$0xff]  ;;  %v2477_v23 = vld [vmem:[#allocation2 + $0xc0] sm:$0xff] }
  0x16   :  { %367 = vmatpush1.msra.mxu0 %v2415_v7  ;;  %1881 = vmatpush3.msk.msra.mxu1 %vm90_vm0, %v44_v17  ;;  %v2484_v24 = vld [vmem:[%s3320_s0 + $0x20] sm:$0xff]  ;;  %v2486_v25 = vld [vmem:[#allocation2 + $0xb0] sm:$0xff]  ;;  %v2489_v26 = vld [vmem:[#allocation2 + $0xa8] sm:$0xff] }
  0x17   :  { %1702 = vmatmul.mubr.msk.f32.gmra.mxu0 %vm65_vm1, %v36_v8  ;;  %368 = vmatprep.subr.mxu0 %v2422_v9  ;;  %v2493_v27 = vld [vmem:[#allocation2 + $0x98] sm:$0xff]  ;;  %v2501_v29 = vld [vmem:[#allocation2 + $0x90] sm:$0xff]  ;;  %v2508_v30 = vld [vmem:[%s3320_s0 + $0x28] sm:$0xff] }
  0x18   :  { %369 = vmatpush1.msra.mxu0 %v2425_v10  ;;  %173 = vmatprep.mubr.f32.mxu0 %v3326_v0  ;;  %v2496_v28 = vld [vmem:[#allocation2 + $0x178] sm:$0xff]  ;;  %v2510_v31 = vld [vmem:[#allocation2 + $0x80] sm:$0xff]  ;;  %v2517_v33 = vld [vmem:[#allocation2 + $0x68] sm:$0xff] }
  0x19   :  { %370 = vmatprep.subr.mxu0 %v2428_v11  ;;  %1894 = vmatprep.subr.mxu1 %v3326_v0  ;;  %v2513_v32 = vld [vmem:[#allocation2 + $0x78] sm:$0xff]  ;;  %v2520_v34 = vld [vmem:[#allocation2 + $0x160] sm:$0xff]  ;;  %v41_v36 = vld [vmem:[%s3320_s0 + $0x30] sm:$0xff] }
  0x1a   :  { %371 = vmatpush1.msra.mxu0 %v2432_v12  ;;  %1883 = vmatmul.mubr.msk.f32.vlgmr.msra.gmra.mxu1 %vm65_vm1, %v36_v8  ;;  %v2525_v35 = vld [vmem:[#allocation2 + $0x60] sm:$0xff]  ;;  %v2532_v37 = vld [vmem:[#allocation2 + $0x50] sm:$0xff]  ;;  %v2535_v38 = vld [vmem:[#allocation2 + $0x48] sm:$0xff] }
  0x1b   :  { %1703 = vmatmul.mubr.msk.f32.gmra.mxu0 %vm65_vm1, %v2439_v13  ;;  %372 = vmatprep.subr.mxu0 %v2441_v14  ;;  %v2539_v39 = vld [vmem:[#allocation2 + $0x38] sm:$0xff]  ;;  %v2542_v40 = vld [vmem:[#allocation2 + $0x148] sm:$0xff]  ;;  %v2546_v41 = vld [vmem:[#allocation2 + $0x30] sm:$0xff] }
  0x1c   :  { %373 = vmatpush1.msra.mxu0 %v2444_v15  ;;  %179 = vmatprep.mubr.f32.mxu0 %v3326_v0  ;;  %v42_v42 = vld [vmem:[%s3320_s0 + $0x38] sm:$0xff]  ;;  %v2553_v43 = vld [vmem:[#allocation2 + $0x20] sm:$0xff]  ;;  %v2560_v45 = vld [vmem:[#allocation2 + $0x8] sm:$0xff] }
  0x1d   :  { %374 = vmatprep.subr.mxu0 %v2447_v16  ;;  %1895 = vmatpush3.msra.mxu1 %v2496_v28  ;;  %v2556_v44 = vld [vmem:[#allocation2 + $0x18] sm:$0xff]  ;;  %3343 = vst [vmem:[#allocation9_spill] sm:$0xff] %v2560_v45  ;;  %v2563_v46 = vld [vmem:[#allocation2 + $0x130] sm:$0xff]  ;;  %v2567_v47 = vld [vmem:[#allocation2] sm:$0xff] }
  0x1e   :  { %375 = vmatpush1.msra.mxu0 %v2455_v18  ;;  %1896 = vmatprep.subr.mxu1 %v3326_v0  ;;  %3344 = vst [vmem:[#allocation10_spill] sm:$0xff] %v2567_v47  ;;  %v2571_v48 = vld [vmem:[#allocation2 + $0x118] sm:$0xff]  ;;  %v2577_v49 = vld [vmem:[#allocation2 + $0x100] sm:$0xff]  ;;  %v2582_v50 = vld [vmem:[#allocation2 + $0xe8] sm:$0xff] }
  0x1f   :  { %1704 = vmatmul.mubr.msk.f32.gmra.mxu0 %vm65_vm1, %v2462_v19  ;;  %376 = vmatprep.subr.mxu0 %v2464_v20  ;;  %v2589_v51 = vld [vmem:[#allocation2 + $0xd0] sm:$0xff]  ;;  %v2597_v52 = vld [vmem:[#allocation2 + $0xb8] sm:$0xff]  ;;  %v2603_v53 = vld [vmem:[#allocation2 + $0xa0] sm:$0xff] }
  0x20   :  { %377 = vmatpush1.msra.mxu0 %v2467_v21  ;;  %185 = vmatprep.mubr.f32.mxu0 %v3326_v0  ;;  %v2610_v54 = vld [vmem:[#allocation2 + $0x88] sm:$0xff]  ;;  %v2616_v55 = vld [vmem:[#allocation2 + $0x70] sm:$0xff]  ;;  %v2623_v56 = vld [vmem:[#allocation2 + $0x58] sm:$0xff] }
  0x21   :  { %378 = vmatprep.subr.mxu0 %v2471_v22  ;;  %1897 = vmatpush3.msra.mxu1 %v2520_v34  ;;  %v2629_v57 = vld [vmem:[#allocation2 + $0x40] sm:$0xff]  ;;  %v2635_v58 = vld [vmem:[#allocation2 + $0x28] sm:$0xff]  ;;  %v2641_v59 = vld [vmem:[#allocation2 + $0x10] sm:$0xff] }
  0x22   :  { %379 = vmatpush1.msra.mxu0 %v2477_v23  ;;  %1898 = vmatprep.subr.mxu1 %v3326_v0  ;;  %3345 = vst [vmem:[#allocation11_spill] sm:$0xff] %v2635_v58  ;;  %3346 = vst [vmem:[#allocation12_spill] sm:$0xff] %v2641_v59  ;;  %v45_v63 = vld [vmem:[%s3323_s3] sm:$0x7] }
  0x23   :  { %1705 = vmatmul.mubr.msk.f32.gmra.mxu0 %vm65_vm1, %v2484_v24  ;;  %380 = vmatprep.subr.mxu0 %v2486_v25  ;;  %v50_v8 = vrot.slane %v45_v63, %v49_v62  ;;  %v54_v17 = vrot.slane %v45_v63, %v53_v2 }
  0x24   :  { %381 = vmatpush1.msra.mxu0 %v2489_v26  ;;  %191 = vmatprep.mubr.f32.mxu0 %v3326_v0 }
  0x25   :  { %382 = vmatprep.subr.mxu0 %v2493_v27  ;;  %1899 = vmatpush3.msra.mxu1 %v2542_v40 }
  0x26   :  { %383 = vmatpush1.msra.mxu0 %v2501_v29  ;;  %1900 = vmatprep.subr.mxu1 %v3326_v0 }
  0x27   :  { %1706 = vmatmul.mubr.msk.f32.gmra.mxu0 %vm65_vm1, %v2508_v30  ;;  %384 = vmatprep.subr.mxu0 %v2510_v31 }
  0x28   :  { %385 = vmatpush1.msra.mxu0 %v2513_v32  ;;  %197 = vmatprep.mubr.f32.mxu0 %v3326_v0 }
  0x29   :  { %386 = vmatprep.subr.mxu0 %v2517_v33  ;;  %1901 = vmatpush3.msra.mxu1 %v2563_v46 }
  0x2a   :  { %387 = vmatpush1.msra.mxu0 %v2525_v35  ;;  %1902 = vmatprep.subr.mxu1 %v3326_v0 }
  0x2b   :  { %1707 = vmatmul.mubr.msk.f32.gmra.mxu0 %vm65_vm1, %v41_v36  ;;  %388 = vmatprep.subr.mxu0 %v2532_v37 }
  0x2c   :  { %389 = vmatpush1.msra.mxu0 %v2535_v38  ;;  %203 = vmatprep.mubr.f32.mxu0 %v3326_v0 }
  0x2d   :  { %390 = vmatprep.subr.mxu0 %v2539_v39  ;;  %1903 = vmatpush3.msra.mxu1 %v2571_v48 }
  0x2e   :  { %391 = vmatpush1.msra.mxu0 %v2546_v41  ;;  %1904 = vmatprep.subr.mxu1 %v3326_v0 }
  0x2f   :  { %1708 = vmatmul.mubr.msk.f32.gmra.mxu0 %vm65_vm1, %v42_v42  ;;  %392 = vmatprep.subr.mxu0 %v2553_v43 }
  0x30   :  { %393 = vmatpush1.msra.mxu0 %v2556_v44  ;;  %428 = vmatprep.mubr.f32.mxu0 %v3326_v0 }
  0x31   :  { %394 = vmatprep.subr.mxu0 %v2560_v45  ;;  %1885 = vmatprep.mubr.msk.f32.mxu1 %vm65_vm1, %v2439_v13 }
  0x32   :  { %395 = vmatpush1.msra.mxu0 %v2567_v47  ;;  %1905 = vmatpush3.msra.mxu1 %v2577_v49 }
  0x33   :  { %429 = vmatmul.mubr.f32.vlgmr.msra.gmra.mxu0 %v3326_v0  ;;  %534 = vmatprep.subr.mxu0 %v2405_v4 }
  0x34   :  { %1906 = vmatprep.subr.mxu1 %v3326_v0  ;;  %1886 = vmatmul.mubr.msk.f32.gmra.mxu1 %vm65_vm1, %v2462_v19 }
  0x35   :  { %1907 = vmatpush3.msra.mxu1 %v2582_v50  ;;  %1888 = vmatprep.mubr.msk.f32.mxu1 %vm65_vm1, %v2484_v24 }
  0x36   :  { %1908 = vmatprep.subr.mxu1 %v3326_v0  ;;  %535 = vmatpush1.msra.mxu0 %v2408_v5 }
  0x37   :  { %1909 = vmatpush3.msra.mxu1 %v2589_v51  ;;  %536 = vmatprep.subr.mxu0 %v2411_v6 }
  0x38   :  { %1910 = vmatprep.subr.mxu1 %v3326_v0  ;;  %1889 = vmatmul.mubr.msk.f32.gmra.mxu1 %vm65_vm1, %v2508_v30 }
  0x39   :  { %1911 = vmatpush3.msra.mxu1 %v2597_v52  ;;  %1891 = vmatprep.mubr.msk.f32.mxu1 %vm65_vm1, %v41_v36 }
  0x3a   :  { %1912 = vmatprep.subr.mxu1 %v3326_v0  ;;  %537 = vmatpush1.msra.mxu0 %v2415_v7 }
  0x3b   :  { %1913 = vmatpush3.msra.mxu1 %v2603_v53  ;;  %538 = vmatprep.subr.mxu0 %v2422_v9 }
  0x3c   :  { %1914 = vmatprep.subr.mxu1 %v3326_v0  ;;  %1892 = vmatmul.mubr.msk.f32.gmra.mxu1 %vm65_vm1, %v42_v42  ;;  %v57_v42 = vsub.s32 2, %v48_v61 }
  0x3d   :  { %1915 = vmatpush3.msra.mxu1 %v2610_v54  ;;  %1926 = vmatprep.mubr.msk.f32.mxu1 %vm2360_vm2, %v3326_v0 }
  0x3e   :  { %1916 = vmatprep.subr.mxu1 %v3326_v0  ;;  %539 = vmatpush1.msra.mxu0 %v2425_v10 }
  0x3f   :  { %1917 = vmatpush3.msra.mxu1 %v2616_v55  ;;  %540 = vmatprep.subr.mxu0 %v2428_v11 }
  0x40   :  { %1918 = vmatprep.subr.mxu1 %v3326_v0  ;;  %541 = vmatpush1.msra.mxu0 %v2432_v12 }
  0x41   :  { %1919 = vmatpush3.msra.mxu1 %v2623_v56  ;;  %542 = vmatprep.subr.mxu0 %v2441_v14 }
  0x42   :  { %1920 = vmatprep.subr.mxu1 %v3326_v0  ;;  %543 = vmatpush1.msra.mxu0 %v2444_v15 }
  0x43   :  { %1921 = vmatpush3.msra.mxu1 %v2629_v57  ;;  %544 = vmatprep.subr.mxu0 %v2447_v16 }
  0x44   :  { %1922 = vmatprep.subr.mxu1 %v3326_v0  ;;  %545 = vmatpush1.msra.mxu0 %v2455_v18 }
  0x45   :  { %1923 = vmatpush3.msra.mxu1 %v2635_v58  ;;  %546 = vmatprep.subr.mxu0 %v2464_v20 }
  0x46   :  { %1924 = vmatprep.subr.mxu1 %v3326_v0  ;;  %547 = vmatpush1.msra.mxu0 %v2467_v21 }
  0x47   :  { %1925 = vmatpush3.msra.mxu1 %v2641_v59  ;;  %548 = vmatprep.subr.mxu0 %v2471_v22 }
  0x48   :  { %1927 = vmatmul.mubr.f32.vlgmr.msra.gmra.mxu1 %v3326_v0  ;;  %1929 = vmatprep.subr.mxu1 %v3326_v0 }
  0x49   :  { %1930 = vmatpush3.msra.mxu1 %v2496_v28  ;;  %549 = vmatpush1.msra.mxu0 %v2477_v23 }
  0x4a   :  { %1931 = vmatprep.subr.mxu1 %v3326_v0  ;;  %550 = vmatprep.subr.mxu0 %v2486_v25 }
  0x4b   :  { %1932 = vmatpush3.msra.mxu1 %v2520_v34  ;;  %551 = vmatpush1.msra.mxu0 %v2489_v26 }
  0x4c   :  { %1933 = vmatprep.subr.mxu1 %v3326_v0  ;;  %552 = vmatprep.subr.mxu0 %v2493_v27 }
  0x4d   :  { %1934 = vmatpush3.msra.mxu1 %v2542_v40  ;;  %553 = vmatpush1.msra.mxu0 %v2501_v29 }
  0x4e   :  { %1935 = vmatprep.subr.mxu1 %v3326_v0  ;;  %554 = vmatprep.subr.mxu0 %v2510_v31 }
  0x4f   :  { %1936 = vmatpush3.msra.mxu1 %v2563_v46  ;;  %555 = vmatpush1.msra.mxu0 %v2513_v32 }
  0x50   :  { %1937 = vmatprep.subr.mxu1 %v3326_v0  ;;  %556 = vmatprep.subr.mxu0 %v2517_v33 }
  0x51   :  { %1938 = vmatpush3.msra.mxu1 %v2571_v48  ;;  %557 = vmatpush1.msra.mxu0 %v2525_v35 }
  0x52   :  { %1939 = vmatprep.subr.mxu1 %v3326_v0  ;;  %558 = vmatprep.subr.mxu0 %v2532_v37 }
  0x53   :  { %1940 = vmatpush3.msra.mxu1 %v2577_v49  ;;  %559 = vmatpush1.msra.mxu0 %v2535_v38 }
  0x54   :  { %1941 = vmatprep.subr.mxu1 %v3326_v0  ;;  %560 = vmatprep.subr.mxu0 %v2539_v39 }
  0x55   :  { %1942 = vmatpush3.msra.mxu1 %v2582_v50  ;;  %561 = vmatpush1.msra.mxu0 %v2546_v41 }
  0x56   :  { %1943 = vmatprep.subr.mxu1 %v3326_v0  ;;  %562 = vmatprep.subr.mxu0 %v2553_v43 }
  0x57   :  { %1944 = vmatpush3.msra.mxu1 %v2589_v51  ;;  %563 = vmatpush1.msra.mxu0 %v2556_v44 }
  0x58   :  { %1945 = vmatprep.subr.mxu1 %v3326_v0  ;;  %564 = vmatprep.subr.mxu0 %v2560_v45 }
  0x59   :  { %1946 = vmatpush3.msra.mxu1 %v2597_v52  ;;  %565 = vmatpush1.msra.mxu0 %v2567_v47  ;;  %v58_v47 = vrot.slane %v45_v63, %v57_v42 }
  0x5a   :  { %1947 = vmatprep.subr.mxu1 %v3326_v0  ;;  %598 = vmatprep.mubr.f32.mxu0 %v3326_v0 }
  0x5b   :  { %1948 = vmatpush3.msra.mxu1 %v2603_v53  ;;  %1961 = vmatprep.mubr.msk.f32.mxu1 %vm2360_vm2, %v3326_v0 }
  0x5c   :  { %1949 = vmatprep.subr.mxu1 %v3326_v0  ;;  %698 = vmatprep.subr.mxu0 %v2405_v4 }
  0x5d   :  { %1950 = vmatpush3.msra.mxu1 %v2610_v54 }
  0x5e   :  { %1951 = vmatprep.subr.mxu1 %v3326_v0 }
  0x5f   :  { %1952 = vmatpush3.msra.mxu1 %v2616_v55 }
  0x60   :  { %1953 = vmatprep.subr.mxu1 %v3326_v0 }
  0x61   :  { %1954 = vmatpush3.msra.mxu1 %v2623_v56 }
  0x62   :  { %1955 = vmatprep.subr.mxu1 %v3326_v0 }
  0x63   :  { %1956 = vmatpush3.msra.mxu1 %v2629_v57 }
  0x64   :  { %1957 = vmatprep.subr.mxu1 %v3326_v0 }
  0x65   :  { %1958 = vmatpush3.msra.mxu1 %v2635_v58 }
  0x66   :  { %1959 = vmatprep.subr.mxu1 %v3326_v0 }
  0x67   :  { %1960 = vmatpush3.msra.mxu1 %v2641_v59 }
  0x68   :  { %1964 = vmatprep.subr.mxu1 %v3326_v0 }
  0xd3   :  { %v163_v1 = vpop.f32.mrf.mxu0 }
  0xd5   :  { %v165_v3 = vpop.f32.mrf.mxu0 }
  0xd7   :  { %v169_v13 = vpop.f32.mrf.mxu0 }
  0xd8   :  { %v2708_v19 = vadd.f32 %v169_v13, %v50_v8 }
  0xd9   :  { %v171_v24 = vpop.f32.mrf.mxu0 }
  0xda   :  { %3347 = vst [vmem:[#allocation13_spill] sm:$0xff] %v2708_v19  ;;  %v2710_v30 = vadd.f32 %v171_v24, %v54_v17  ;;  %v1884_v2 = vpop.f32.mrf.mxu1 }
  0xdb   :  { %v175_v36 = vpop.f32.mrf.mxu0  ;;  %v2720_v19 = vadd.f32 %v1884_v2, %v58_v47 }
  0xdc   :  { %3348 = vst [vmem:[#allocation14_spill] sm:$0xff] %v2710_v30  ;;  %v2712_v0 = vadd.f32 %v175_v36, %v50_v8 }
  0xdd   :  { %v177_v60 = vpop.f32.mrf.mxu0  ;;  %3353 = vst [vmem:[#allocation19_spill] sm:$0xff] %v2720_v19 }
  0xde   :  { %3349 = vst [vmem:[#allocation15_spill] sm:$0xff] %v2712_v0  ;;  %v2714_v4 = vadd.f32 %v177_v60, %v54_v17 }
  0xdf   :  { %v181_v59 = vpop.f32.mrf.mxu0 }
  0xe0   :  { %3350 = vst [vmem:[#allocation16_spill] sm:$0xff] %v2714_v4  ;;  %v2716_v45 = vadd.f32 %v181_v59, %v50_v8 }
  0xe1   :  { %v183_v58 = vpop.f32.mrf.mxu0 }
  0xe2   :  { %3351 = vst [vmem:[#allocation17_spill] sm:$0xff] %v2716_v45  ;;  %v2718_v62 = vadd.f32 %v183_v58, %v54_v17 }
  0xe3   :  { %v187_v13 = vpop.f32.mrf.mxu0 }
  0xe4   :  { %3352 = vst [vmem:[#allocation18_spill] sm:$0xff] %v2718_v62  ;;  %v2722_v24 = vadd.f32 %v187_v13, %v50_v8 }
  0xe5   :  { %v189_v30 = vpop.f32.mrf.mxu0 }
  0xe6   :  { %3354 = vst [vmem:[#allocation20_spill] sm:$0xff] %v2722_v24  ;;  %v2724_v61 = vadd.f32 %v189_v30, %v54_v17  ;;  %v164_v24 = vadd.f32 %v163_v1, %v50_v8 }
  0xe7   :  { %v193_v36 = vpop.f32.mrf.mxu0 }
  0xe8   :  { %3355 = vst [vmem:[#allocation21_spill] sm:$0xff] %v2724_v61  ;;  %v2726_v0 = vadd.f32 %v193_v36, %v50_v8  ;;  %v276_v36 = vpop.f32.mrf.mxu1 }
  0xe9   :  { %v195_v60 = vpop.f32.mrf.mxu0 }
  0xea   :  { %3356 = vst [vmem:[#allocation22_spill] sm:$0xff] %v2726_v0  ;;  %v2728_v4 = vadd.f32 %v195_v60, %v54_v17 }
  0xeb   :  { %v199_v59 = vpop.f32.mrf.mxu0 }
  0xec   :  { %3357 = vst [vmem:[#allocation23_spill] sm:$0xff] %v2728_v4  ;;  %v2730_v63 = vadd.f32 %v199_v59, %v50_v8  ;;  %v166_v59 = vadd.f32 %v165_v3, %v54_v17 }
  0xed   :  { %v201_v58 = vpop.f32.mrf.mxu0 }
  0xee   :  { %3358 = vst [vmem:[#allocation24_spill] sm:$0xff] %v2730_v63  ;;  %v2732_v42 = vadd.f32 %v201_v58, %v54_v17 }
  0xef   :  { %v205_v62 = vpop.f32.mrf.mxu0 }
  0xf0   :  { %3359 = vst [vmem:[#allocation25_spill] sm:$0xff] %v2732_v42  ;;  %v2734_v2 = vadd.f32 %v205_v62, %v50_v8 }
  0xf1   :  { %v207_v13 = vpop.f32.mrf.mxu0 }
  0xf2   :  { %3360 = vst [vmem:[#allocation26_spill] sm:$0xff] %v2734_v2  ;;  %v2736_v45 = vadd.f32 %v207_v13, %v54_v17 }
  0xf3   :  { %v430_v30 = vpop.f32.mrf.mxu0 }
  0xf4   :  { %3361 = vst [vmem:[#allocation27_spill] sm:$0xff] %v2736_v45  ;;  %v505_v61 = vadd.f32 %v430_v30, %v164_v24  ;;  %v1887_v19 = vpop.f32.mrf.mxu1 }
  0xf5   :  { %v432_v60 = vpop.f32.mrf.mxu0  ;;  %v2738_v4 = vadd.f32 %v1887_v19, %v58_v47 }
  0xf6   :  { %v1718_v0 = vmul.f32 -1.442695, %v505_v61  ;;  %v286_v63 = vpop.f32.mrf.mxu1  ;;  %v512_v42 = vadd.f32 %v432_v60, %v166_v59  ;;  %v2753_v60 = vld [vmem:[%s3324_s4] ss:$0 sm:$0xff] }
  0xf7   :  { %3362 = vst [vmem:[#allocation28_spill] sm:$0xff] %v2738_v4  ;;  %v2740_v58 = vadd.f32 %v286_v63, %v58_v47 }
  0xf8   :  { %2183 = vpow2.f32 %v1718_v0  ;;  %v1890_v62 = vpop.f32.mrf.mxu1  ;;  %v1719_v13 = vmul.f32 -1.442695, %v512_v42 }
  0xf9   :  { %3363 = vst [vmem:[#allocation29_spill] sm:$0xff] %v2740_v58  ;;  %v2742_v2 = vadd.f32 %v1890_v62, %v58_v47 }
  0xfa   :  { %v296_v1 = vpop.f32.mrf.mxu1  ;;  %2185 = vpow2.f32 %v1719_v13 }
  0xfb   :  { %3364 = vst [vmem:[#allocation30_spill] sm:$0xff] %v2742_v2  ;;  %v2744_v8 = vadd.f32 %v296_v1, %v58_v47  ;;  %v277_v1 = vadd.f32 %v276_v36, %v58_v47  ;;  %v3369_v36 = vld [vmem:[#allocation11_spill] sm:$0xff] }
  0xfc   :  { %v1893_v24 = vpop.f32.mrf.mxu1 }
  0xfd   :  { %3365 = vst [vmem:[#allocation31_spill] sm:$0xff] %v2744_v8  ;;  %v2746_v30 = vadd.f32 %v1893_v24, %v58_v47 }
  0xfe   :  { %v306_v61 = vpop.f32.mrf.mxu1 }
  0xff   :  { %3366 = vst [vmem:[#allocation32_spill] sm:$0xff] %v2746_v30  ;;  %v2748_v45 = vadd.f32 %v306_v61, %v58_v47  ;;  %v3368_v47 = vmov 0.0  }
 0x101   :  { %3367 = vst [vmem:[#allocation33_spill] sm:$0xff] %v2748_v45 }
 0x105   :  { %v2184_v3 = vpop.eup %2183 }
 0x106   :  { %v509_v0 = vadd.f32 1.0, %v2184_v3 }
 0x107   :  { %v2186_v63 = vpop.eup %2185 }
 0x108   :  { %2187 = vrcp.f32 %v509_v0  ;;  %v501_v17 = vpop.f32.mrf.mxu1  ;;  %v516_v59 = vadd.f32 1.0, %v2186_v63  ;;  %v3372_v63 = vld [vmem:[#allocation12_spill] sm:$0xff] }
 0x109   :  { %v525_v42 = vadd.f32 %v2753_v60, %v501_v17  ;;  %v3371_v17 = vld [vmem:[#allocation10_spill] sm:$0xff] }
 0x10a   :  { %v1928_v19 = vpop.f32.mrf.mxu1  ;;  %2189 = vrcp.f32 %v516_v59  ;;  %v3373_v59 = vld [vmem:[#allocation8_spill] sm:$0xff] }
 0x115   :  { %v2188_v62 = vpop.eup %2187 }
 0x116   :  { %v526_v24 = vmul.f32 %v2188_v62, %v525_v42 }
 0x117   :  { %v2190_v13 = vpop.eup %2189 }
 0x118   :  { %v527_v61 = vadd.f32 %v526_v24, %v277_v1  ;;  %v529_v3 = vsub.f32 1.0, %v2190_v13  ;;  %v531_v19 = vmul.f32 0.0, %v2190_v13  ;;  %v3374_v1 = vld [vmem:[#allocation13_spill] sm:$0xff] }
 0x11a   :  { %2191 = vtanh.f32 %v527_v61 }
 0x127   :  { %v2192_v0 = vpop.eup %2191 }
 0x128   :  { %v530_v30 = vmul.f32 %v2192_v0, %v529_v3  ;;  %v3375_v0 = vld [vmem:[#allocation14_spill] sm:$0xff] }
 0x12a   :  { %v2756_v45 = vadd.f32 %v531_v19, %v530_v30  ;;  %v3370_v30 = vld [vmem:[#allocation9_spill] sm:$0xff] }
 0x12c   :  { %533 = vst [vmem:[#allocation5] sm:$0xff] %v2756_v45  ;;  %599 = vmatmul.mubr.f32.vlgmr.msra.gmra.mxu0 %v2756_v45  ;;  %1962 = vmatmul.mubr.f32.vlgmr.msra.gmra.mxu1 %v2756_v45 }
 0x12d   :  { %699 = vmatpush1.msra.mxu0 %v2408_v5  ;;  %1965 = vmatpush3.msra.mxu1 %v2496_v28 }
 0x12e   :  { %700 = vmatprep.subr.mxu0 %v2411_v6  ;;  %1966 = vmatprep.subr.mxu1 %v3368_v47 }
 0x12f   :  { %701 = vmatpush1.msra.mxu0 %v2415_v7  ;;  %1967 = vmatpush3.msra.mxu1 %v2520_v34 }
 0x130   :  { %702 = vmatprep.subr.mxu0 %v2422_v9  ;;  %1968 = vmatprep.subr.mxu1 %v3368_v47 }
 0x131   :  { %703 = vmatpush1.msra.mxu0 %v2425_v10  ;;  %1969 = vmatpush3.msra.mxu1 %v2542_v40 }
 0x132   :  { %704 = vmatprep.subr.mxu0 %v2428_v11  ;;  %1970 = vmatprep.subr.mxu1 %v3368_v47 }
 0x133   :  { %705 = vmatpush1.msra.mxu0 %v2432_v12  ;;  %1971 = vmatpush3.msra.mxu1 %v2563_v46 }
 0x134   :  { %706 = vmatprep.subr.mxu0 %v2441_v14  ;;  %1972 = vmatprep.subr.mxu1 %v3368_v47 }
 0x135   :  { %707 = vmatpush1.msra.mxu0 %v2444_v15  ;;  %1973 = vmatpush3.msra.mxu1 %v2571_v48 }
 0x136   :  { %708 = vmatprep.subr.mxu0 %v2447_v16  ;;  %1974 = vmatprep.subr.mxu1 %v3368_v47 }
 0x137   :  { %709 = vmatpush1.msra.mxu0 %v2455_v18  ;;  %1975 = vmatpush3.msra.mxu1 %v2577_v49 }
 0x138   :  { %710 = vmatprep.subr.mxu0 %v2464_v20  ;;  %1976 = vmatprep.subr.mxu1 %v3368_v47 }
 0x139   :  { %711 = vmatpush1.msra.mxu0 %v2467_v21  ;;  %1977 = vmatpush3.msra.mxu1 %v2582_v50 }
 0x13a   :  { %712 = vmatprep.subr.mxu0 %v2471_v22  ;;  %1978 = vmatprep.subr.mxu1 %v3368_v47 }
 0x13b   :  { %713 = vmatpush1.msra.mxu0 %v2477_v23  ;;  %1979 = vmatpush3.msra.mxu1 %v2589_v51 }
 0x13c   :  { %714 = vmatprep.subr.mxu0 %v2486_v25  ;;  %1980 = vmatprep.subr.mxu1 %v3368_v47 }
 0x13d   :  { %715 = vmatpush1.msra.mxu0 %v2489_v26  ;;  %1981 = vmatpush3.msra.mxu1 %v2597_v52 }
 0x13e   :  { %716 = vmatprep.subr.mxu0 %v2493_v27  ;;  %1982 = vmatprep.subr.mxu1 %v3368_v47 }
 0x13f   :  { %717 = vmatpush1.msra.mxu0 %v2501_v29  ;;  %1983 = vmatpush3.msra.mxu1 %v2603_v53 }
 0x140   :  { %718 = vmatprep.subr.mxu0 %v2510_v31  ;;  %1984 = vmatprep.subr.mxu1 %v3368_v47 }
 0x141   :  { %719 = vmatpush1.msra.mxu0 %v2513_v32  ;;  %1985 = vmatpush3.msra.mxu1 %v2610_v54 }
 0x142   :  { %720 = vmatprep.subr.mxu0 %v2517_v33  ;;  %1986 = vmatprep.subr.mxu1 %v3368_v47 }
 0x143   :  { %721 = vmatpush1.msra.mxu0 %v2525_v35  ;;  %1987 = vmatpush3.msra.mxu1 %v2616_v55 }
 0x144   :  { %722 = vmatprep.subr.mxu0 %v2532_v37  ;;  %1988 = vmatprep.subr.mxu1 %v3368_v47 }
 0x145   :  { %723 = vmatpush1.msra.mxu0 %v2535_v38  ;;  %1989 = vmatpush3.msra.mxu1 %v2623_v56 }
 0x146   :  { %724 = vmatprep.subr.mxu0 %v2539_v39  ;;  %1990 = vmatprep.subr.mxu1 %v3368_v47 }
 0x147   :  { %725 = vmatpush1.msra.mxu0 %v2546_v41  ;;  %1991 = vmatpush3.msra.mxu1 %v2629_v57 }
 0x148   :  { %726 = vmatprep.subr.mxu0 %v2553_v43  ;;  %1992 = vmatprep.subr.mxu1 %v3368_v47 }
 0x149   :  { %727 = vmatpush1.msra.mxu0 %v2556_v44  ;;  %1993 = vmatpush3.msra.mxu1 %v3369_v36  ;;  %v3376_v36 = vld [vmem:[#allocation19_spill] sm:$0xff] }
 0x14a   :  { %728 = vmatprep.subr.mxu0 %v3370_v30  ;;  %1994 = vmatprep.subr.mxu1 %v3368_v47 }
 0x14b   :  { %729 = vmatpush1.msra.mxu0 %v3371_v17  ;;  %762 = vmatprep.mubr.f32.mxu0 %v3368_v47 }
 0x14c   :  { %1995 = vmatpush3.msra.mxu1 %v3372_v63  ;;  %1996 = vmatprep.mubr.msk.f32.mxu1 %vm2360_vm2, %v3368_v47 }
 0x14d   :  { %862 = vmatprep.subr.mxu0 %v3373_v59  ;;  %1999 = vmatprep.subr.mxu1 %v3368_v47 }
 0x1ec   :  { %v600_v42 = vpop.f32.mrf.mxu0  ;;  %v671_v62 = vpop.f32.mrf.mxu1 }
 0x1ed   :  { %v675_v24 = vadd.f32 %v600_v42, %v3374_v1  ;;  %v689_v59 = vadd.f32 %v2753_v60, %v671_v62 }
 0x1ee   :  { %v1963_v61 = vpop.f32.mrf.mxu1  ;;  %v602_v3 = vpop.f32.mrf.mxu0 }
 0x1ef   :  { %v1721_v13 = vmul.f32 -1.442695, %v675_v24  ;;  %v682_v19 = vadd.f32 %v602_v3, %v3375_v0 }
 0x1f1   :  { %2193 = vpow2.f32 %v1721_v13  ;;  %v1722_v2 = vmul.f32 -1.442695, %v682_v19 }
 0x1f3   :  { %2195 = vpow2.f32 %v1722_v2 }
 0x1fe   :  { %v2194_v8 = vpop.eup %2193 }
 0x1ff   :  { %v679_v4 = vadd.f32 1.0, %v2194_v8  ;;  %v3380_v8 = vld [vmem:[#allocation12_spill] sm:$0xff] }
 0x200   :  { %v2196_v58 = vpop.eup %2195 }
 0x201   :  { %2197 = vrcp.f32 %v679_v4  ;;  %v686_v63 = vadd.f32 1.0, %v2196_v58  ;;  %v3377_v4 = vld [vmem:[#allocation11_spill] sm:$0xff]  ;;  %v3379_v58 = vld [vmem:[#allocation10_spill] sm:$0xff] }
 0x203   :  { %2199 = vrcp.f32 %v686_v63  ;;  %v3382_v63 = vld [vmem:[#allocation15_spill] sm:$0xff] }
 0x20e   :  { %v2198_v17 = vpop.eup %2197 }
 0x20f   :  { %v690_v30 = vmul.f32 %v2198_v17, %v689_v59 }
 0x210   :  { %v2200_v1 = vpop.eup %2199 }
 0x211   :  { %v691_v42 = vadd.f32 %v690_v30, %v3376_v36  ;;  %v693_v24 = vsub.f32 1.0, %v2200_v1  ;;  %v695_v3 = vmul.f32 %v2200_v1, %v2756_v45  ;;  %v3378_v45 = vld [vmem:[#allocation9_spill] sm:$0xff]  ;;  %v3381_v36 = vld [vmem:[#allocation8_spill] sm:$0xff] }
 0x213   :  { %2201 = vtanh.f32 %v691_v42  ;;  %v3383_v42 = vld [vmem:[#allocation16_spill] sm:$0xff] }
 0x220   :  { %v2202_v61 = vpop.eup %2201 }
 0x221   :  { %v694_v13 = vmul.f32 %v2202_v61, %v693_v24 }
 0x223   :  { %v2833_v2 = vadd.f32 %v695_v3, %v694_v13 }
 0x225   :  { %697 = vst [vmem:[#allocation5 + $0x8] sm:$0xff] %v2833_v2  ;;  %763 = vmatmul.mubr.f32.vlgmr.msra.gmra.mxu0 %v2833_v2  ;;  %1997 = vmatmul.mubr.f32.vlgmr.msra.gmra.mxu1 %v2833_v2 }
 0x226   :  { %863 = vmatpush1.msra.mxu0 %v2408_v5  ;;  %2000 = vmatpush3.msra.mxu1 %v2496_v28 }
 0x227   :  { %864 = vmatprep.subr.mxu0 %v2411_v6  ;;  %2001 = vmatprep.subr.mxu1 %v3368_v47 }
 0x228   :  { %865 = vmatpush1.msra.mxu0 %v2415_v7  ;;  %2002 = vmatpush3.msra.mxu1 %v2520_v34 }
 0x229   :  { %866 = vmatprep.subr.mxu0 %v2422_v9  ;;  %2003 = vmatprep.subr.mxu1 %v3368_v47 }
 0x22a   :  { %867 = vmatpush1.msra.mxu0 %v2425_v10  ;;  %2004 = vmatpush3.msra.mxu1 %v2542_v40 }
 0x22b   :  { %868 = vmatprep.subr.mxu0 %v2428_v11  ;;  %2005 = vmatprep.subr.mxu1 %v3368_v47 }
 0x22c   :  { %869 = vmatpush1.msra.mxu0 %v2432_v12  ;;  %2006 = vmatpush3.msra.mxu1 %v2563_v46 }
 0x22d   :  { %870 = vmatprep.subr.mxu0 %v2441_v14  ;;  %2007 = vmatprep.subr.mxu1 %v3368_v47 }
 0x22e   :  { %871 = vmatpush1.msra.mxu0 %v2444_v15  ;;  %2008 = vmatpush3.msra.mxu1 %v2571_v48 }
 0x22f   :  { %872 = vmatprep.subr.mxu0 %v2447_v16  ;;  %2009 = vmatprep.subr.mxu1 %v3368_v47 }
 0x230   :  { %873 = vmatpush1.msra.mxu0 %v2455_v18  ;;  %2010 = vmatpush3.msra.mxu1 %v2577_v49 }
 0x231   :  { %874 = vmatprep.subr.mxu0 %v2464_v20  ;;  %2011 = vmatprep.subr.mxu1 %v3368_v47 }
 0x232   :  { %875 = vmatpush1.msra.mxu0 %v2467_v21  ;;  %2012 = vmatpush3.msra.mxu1 %v2582_v50 }
 0x233   :  { %876 = vmatprep.subr.mxu0 %v2471_v22  ;;  %2013 = vmatprep.subr.mxu1 %v3368_v47 }
 0x234   :  { %877 = vmatpush1.msra.mxu0 %v2477_v23  ;;  %2014 = vmatpush3.msra.mxu1 %v2589_v51 }
 0x235   :  { %878 = vmatprep.subr.mxu0 %v2486_v25  ;;  %2015 = vmatprep.subr.mxu1 %v3368_v47 }
 0x236   :  { %879 = vmatpush1.msra.mxu0 %v2489_v26  ;;  %2016 = vmatpush3.msra.mxu1 %v2597_v52 }
 0x237   :  { %880 = vmatprep.subr.mxu0 %v2493_v27  ;;  %2017 = vmatprep.subr.mxu1 %v3368_v47 }
 0x238   :  { %881 = vmatpush1.msra.mxu0 %v2501_v29  ;;  %2018 = vmatpush3.msra.mxu1 %v2603_v53 }
 0x239   :  { %882 = vmatprep.subr.mxu0 %v2510_v31  ;;  %2019 = vmatprep.subr.mxu1 %v3368_v47 }
 0x23a   :  { %883 = vmatpush1.msra.mxu0 %v2513_v32  ;;  %2020 = vmatpush3.msra.mxu1 %v2610_v54 }
 0x23b   :  { %884 = vmatprep.subr.mxu0 %v2517_v33  ;;  %2021 = vmatprep.subr.mxu1 %v3368_v47 }
 0x23c   :  { %885 = vmatpush1.msra.mxu0 %v2525_v35  ;;  %2022 = vmatpush3.msra.mxu1 %v2616_v55 }
 0x23d   :  { %886 = vmatprep.subr.mxu0 %v2532_v37  ;;  %2023 = vmatprep.subr.mxu1 %v3368_v47 }
 0x23e   :  { %887 = vmatpush1.msra.mxu0 %v2535_v38  ;;  %2024 = vmatpush3.msra.mxu1 %v2623_v56 }
 0x23f   :  { %888 = vmatprep.subr.mxu0 %v2539_v39  ;;  %2025 = vmatprep.subr.mxu1 %v3368_v47 }
 0x240   :  { %889 = vmatpush1.msra.mxu0 %v2546_v41  ;;  %2026 = vmatpush3.msra.mxu1 %v2629_v57 }
 0x241   :  { %890 = vmatprep.subr.mxu0 %v2553_v43  ;;  %2027 = vmatprep.subr.mxu1 %v3368_v47 }
 0x242   :  { %891 = vmatpush1.msra.mxu0 %v2556_v44  ;;  %2028 = vmatpush3.msra.mxu1 %v3377_v4  ;;  %v3384_v4 = vld [vmem:[#allocation29_spill] sm:$0xff] }
 0x243   :  { %892 = vmatprep.subr.mxu0 %v3378_v45  ;;  %2029 = vmatprep.subr.mxu1 %v3368_v47 }
 0x244   :  { %893 = vmatpush1.msra.mxu0 %v3379_v58  ;;  %926 = vmatprep.mubr.f32.mxu0 %v3368_v47 }
 0x245   :  { %2030 = vmatpush3.msra.mxu1 %v3380_v8  ;;  %2031 = vmatprep.mubr.msk.f32.mxu1 %vm2360_vm2, %v3368_v47 }
 0x246   :  { %1026 = vmatprep.subr.mxu0 %v3381_v36  ;;  %2034 = vmatprep.subr.mxu1 %v3368_v47 }
 0x2e5   :  { %v764_v30 = vpop.f32.mrf.mxu0  ;;  %v835_v17 = vpop.f32.mrf.mxu1 }
 0x2e6   :  { %v839_v59 = vadd.f32 %v764_v30, %v3382_v63  ;;  %v853_v36 = vadd.f32 %v2753_v60, %v835_v17  ;;  %v3020_v17 = vld [vmem:[#allocation2 + $0x128] sm:$0xff] }
 0x2e7   :  { %v1998_v62 = vpop.f32.mrf.mxu1  ;;  %v766_v19 = vpop.f32.mrf.mxu0 }
 0x2e8   :  { %v1723_v0 = vmul.f32 -1.442695, %v839_v59  ;;  %v846_v1 = vadd.f32 %v766_v19, %v3383_v42 }
 0x2ea   :  { %2203 = vpow2.f32 %v1723_v0  ;;  %v1724_v24 = vmul.f32 -1.442695, %v846_v1  ;;  %v3024_v1 = vld [vmem:[#allocation2 + $0x120] sm:$0xff] }
 0x2ec   :  { %2205 = vpow2.f32 %v1724_v24  ;;  %v3027_v24 = vld [vmem:[#allocation2 + $0x130] sm:$0xff] }
 0x2f7   :  { %v2204_v61 = vpop.eup %2203 }
 0x2f8   :  { %v843_v13 = vadd.f32 1.0, %v2204_v61  ;;  %v3030_v61 = vld [vmem:[#allocation2 + $0x110] sm:$0xff] }
 0x2f9   :  { %v2206_v3 = vpop.eup %2205 }
 0x2fa   :  { %2207 = vrcp.f32 %v843_v13  ;;  %v850_v8 = vadd.f32 1.0, %v2206_v3  ;;  %v3034_v13 = vld [vmem:[#allocation2 + $0x108] sm:$0xff]  ;;  %v3038_v3 = vld [vmem:[#allocation2 + $0xf8] sm:$0xff] }
 0x2fc   :  { %2209 = vrcp.f32 %v850_v8  ;;  %v3017_v8 = vld [vmem:[#allocation2 + $0x148] sm:$0xff] }
 0x307   :  { %v2208_v58 = vpop.eup %2207 }
 0x308   :  { %v854_v45 = vmul.f32 %v2208_v58, %v853_v36  ;;  %v3014_v58 = vld [vmem:[#allocation2 + $0x138] sm:$0xff]  ;;  %v3042_v36 = vld [vmem:[#allocation2 + $0xf0] sm:$0xff] }
 0x309   :  { %v2210_v63 = vpop.eup %2209 }
 0x30a   :  { %v855_v30 = vadd.f32 %v854_v45, %v3384_v4  ;;  %v857_v59 = vsub.f32 1.0, %v2210_v63  ;;  %v859_v19 = vmul.f32 %v2210_v63, %v2833_v2  ;;  %v3004_v2 = vld [vmem:[#allocation2 + $0x150] sm:$0xff]  ;;  %v3007_v4 = vld [vmem:[#allocation2 + $0x160] sm:$0xff]  ;;  %v3050_v63 = vld [vmem:[#allocation2 + $0xd8] sm:$0xff] }
 0x30b   :  { %v3010_v45 = vld [vmem:[#allocation2 + $0x140] sm:$0xff] }
 0x30c   :  { %2211 = vtanh.f32 %v855_v30  ;;  %v3046_v30 = vld [vmem:[#allocation2 + $0xe0] sm:$0xff] }
 0x319   :  { %v2212_v62 = vpop.eup %2211 }
 0x31a   :  { %v858_v0 = vmul.f32 %v2212_v62, %v857_v59  ;;  %v3058_v59 = vld [vmem:[#allocation2 + $0xc0] sm:$0xff]  ;;  %v3066_v62 = vld [vmem:[#allocation2 + $0xa8] sm:$0xff] }
 0x31c   :  { %v2910_v42 = vadd.f32 %v859_v19, %v858_v0  ;;  %v3074_v0 = vld [vmem:[#allocation2 + $0x90] sm:$0xff]  ;;  %v3082_v19 = vld [vmem:[#allocation2 + $0x78] sm:$0xff] }
 0x31e   :  { %861 = vst [vmem:[#allocation5 + $0x10] sm:$0xff] %v2910_v42  ;;  %927 = vmatmul.mubr.f32.vlgmr.msra.gmra.mxu0 %v2910_v42  ;;  %2032 = vmatmul.mubr.f32.vlgmr.msra.gmra.mxu1 %v2910_v42 }
 0x31f   :  { %1027 = vmatpush1.msra.mxu0 %v2408_v5  ;;  %2035 = vmatpush3.msra.mxu1 %v2496_v28  ;;  %v3385_v5 = vld [vmem:[#allocation11_spill] sm:$0xff] }
 0x320   :  { %1028 = vmatprep.subr.mxu0 %v2411_v6  ;;  %2036 = vmatprep.subr.mxu1 %v3368_v47  ;;  %v3386_v6 = vld [vmem:[#allocation9_spill] sm:$0xff] }
 0x321   :  { %1029 = vmatpush1.msra.mxu0 %v2415_v7  ;;  %2037 = vmatpush3.msra.mxu1 %v2520_v34  ;;  %v3387_v7 = vld [vmem:[#allocation10_spill] sm:$0xff] }
 0x322   :  { %1030 = vmatprep.subr.mxu0 %v2422_v9  ;;  %2038 = vmatprep.subr.mxu1 %v3368_v47  ;;  %v3388_v9 = vld [vmem:[#allocation12_spill] sm:$0xff] }
 0x323   :  { %1031 = vmatpush1.msra.mxu0 %v2425_v10  ;;  %2039 = vmatpush3.msra.mxu1 %v2542_v40  ;;  %v2980_v10 = vld [vmem:[#allocation2 + $0x170] sm:$0xff] }
 0x324   :  { %1032 = vmatprep.subr.mxu0 %v2428_v11  ;;  %2040 = vmatprep.subr.mxu1 %v3368_v47 }
 0x325   :  { %1033 = vmatpush1.msra.mxu0 %v2432_v12  ;;  %2041 = vmatpush3.msra.mxu1 %v2563_v46  ;;  %v3000_v46 = vld [vmem:[#allocation2 + $0x158] sm:$0xff] }
 0x326   :  { %1034 = vmatprep.subr.mxu0 %v2441_v14  ;;  %2042 = vmatprep.subr.mxu1 %v3368_v47  ;;  %v3389_v14 = vld [vmem:[#allocation17_spill] sm:$0xff] }
 0x327   :  { %1035 = vmatpush1.msra.mxu0 %v2444_v15  ;;  %2043 = vmatpush3.msra.mxu1 %v2571_v48 }
 0x328   :  { %1036 = vmatprep.subr.mxu0 %v2447_v16  ;;  %2044 = vmatprep.subr.mxu1 %v3368_v47 }
 0x329   :  { %1037 = vmatpush1.msra.mxu0 %v2455_v18  ;;  %2045 = vmatpush3.msra.mxu1 %v2577_v49 }
 0x32a   :  { %1038 = vmatprep.subr.mxu0 %v2464_v20  ;;  %2046 = vmatprep.subr.mxu1 %v3368_v47 }
 0x32b   :  { %1039 = vmatpush1.msra.mxu0 %v2467_v21  ;;  %2047 = vmatpush3.msra.mxu1 %v2582_v50  ;;  %v3390_v21 = vld [vmem:[#allocation18_spill] sm:$0xff] }
 0x32c   :  { %1040 = vmatprep.subr.mxu0 %v2471_v22  ;;  %2048 = vmatprep.subr.mxu1 %v3368_v47 }
 0x32d   :  { %1041 = vmatpush1.msra.mxu0 %v2477_v23  ;;  %2049 = vmatpush3.msra.mxu1 %v2589_v51 }
 0x32e   :  { %1042 = vmatprep.subr.mxu0 %v2486_v25  ;;  %2050 = vmatprep.subr.mxu1 %v3368_v47 }
 0x32f   :  { %1043 = vmatpush1.msra.mxu0 %v2489_v26  ;;  %2051 = vmatpush3.msra.mxu1 %v2597_v52 }
 0x330   :  { %1044 = vmatprep.subr.mxu0 %v2493_v27  ;;  %2052 = vmatprep.subr.mxu1 %v3368_v47 }
 0x331   :  { %1045 = vmatpush1.msra.mxu0 %v2501_v29  ;;  %2053 = vmatpush3.msra.mxu1 %v2603_v53 }
 0x332   :  { %1046 = vmatprep.subr.mxu0 %v2510_v31  ;;  %2054 = vmatprep.subr.mxu1 %v3368_v47 }
 0x333   :  { %1047 = vmatpush1.msra.mxu0 %v2513_v32  ;;  %2055 = vmatpush3.msra.mxu1 %v2610_v54 }
 0x334   :  { %1048 = vmatprep.subr.mxu0 %v2517_v33  ;;  %2056 = vmatprep.subr.mxu1 %v3368_v47  ;;  %v3391_v33 = vld [vmem:[#allocation28_spill] sm:$0xff] }
 0x335   :  { %1049 = vmatpush1.msra.mxu0 %v2525_v35  ;;  %2057 = vmatpush3.msra.mxu1 %v2616_v55 }
 0x336   :  { %1050 = vmatprep.subr.mxu0 %v2532_v37  ;;  %2058 = vmatprep.subr.mxu1 %v3368_v47 }
 0x337   :  { %1051 = vmatpush1.msra.mxu0 %v2535_v38  ;;  %2059 = vmatpush3.msra.mxu1 %v2623_v56 }
 0x338   :  { %1052 = vmatprep.subr.mxu0 %v2539_v39  ;;  %2060 = vmatprep.subr.mxu1 %v3368_v47 }
 0x339   :  { %1053 = vmatpush1.msra.mxu0 %v2546_v41  ;;  %2061 = vmatpush3.msra.mxu1 %v2629_v57 }
 0x33a   :  { %1054 = vmatprep.subr.mxu0 %v2553_v43  ;;  %2062 = vmatprep.subr.mxu1 %v3368_v47  ;;  %v2994_v43 = vld [vmem:[#allocation2 + $0x168] sm:$0xff] }
 0x33b   :  { %1055 = vmatpush1.msra.mxu0 %v2556_v44  ;;  %2063 = vmatpush3.msra.mxu1 %v3385_v5  ;;  %v2997_v44 = vld [vmem:[#allocation2 + $0x178] sm:$0xff] }
 0x33c   :  { %1056 = vmatprep.subr.mxu0 %v3386_v6  ;;  %2064 = vmatprep.subr.mxu1 %v3368_v47  ;;  %v3098_v6 = vld [vmem:[#allocation2 + $0x48] sm:$0xff] }
 0x33d   :  { %1057 = vmatpush1.msra.mxu0 %v3387_v7  ;;  %1090 = vmatprep.mubr.f32.mxu0 %v3368_v47  ;;  %v3106_v7 = vld [vmem:[#allocation2 + $0x30] sm:$0xff] }
 0x33e   :  { %2065 = vmatpush3.msra.mxu1 %v3388_v9  ;;  %2066 = vmatprep.mubr.msk.f32.mxu1 %vm2360_vm2, %v3368_v47 }
 0x33f   :  { %1190 = vmatprep.subr.mxu0 %v2980_v10  ;;  %2069 = vmatprep.subr.mxu1 %v3368_v47 }
 0x3de   :  { %v928_v11 = vpop.f32.mrf.mxu0  ;;  %v999_v12 = vpop.f32.mrf.mxu1 }
 0x3df   :  { %v1003_v15 = vadd.f32 %v928_v11, %v3389_v14  ;;  %v1017_v29 = vadd.f32 %v2753_v60, %v999_v12  ;;  %v3114_v11 = vld [vmem:[#allocation2 + $0x18] sm:$0xff]  ;;  %v3122_v12 = vld [vmem:[#allocation2] sm:$0xff] }
 0x3e0   :  { %v2033_v16 = vpop.f32.mrf.mxu1  ;;  %v930_v20 = vpop.f32.mrf.mxu0  ;;  %3393 = vst [vmem:[#allocation14_spill] sm:$0xff] %v3122_v12  ;;  %v3394_v14 = vld [vmem:[#allocation20_spill] sm:$0xff] }
 0x3e1   :  { %v1725_v18 = vmul.f32 -1.442695, %v1003_v15  ;;  %v1010_v22 = vadd.f32 %v930_v20, %v3390_v21  ;;  %v3395_v21 = vld [vmem:[#allocation21_spill] sm:$0xff] }
 0x3e3   :  { %2213 = vpow2.f32 %v1725_v18  ;;  %v1726_v23 = vmul.f32 -1.442695, %v1010_v22 }
 0x3e5   :  { %2215 = vpow2.f32 %v1726_v23 }
 0x3f0   :  { %v2214_v25 = vpop.eup %2213 }
 0x3f1   :  { %v1007_v26 = vadd.f32 1.0, %v2214_v25 }
 0x3f2   :  { %v2216_v27 = vpop.eup %2215 }
 0x3f3   :  { %2217 = vrcp.f32 %v1007_v26  ;;  %v1014_v28 = vadd.f32 1.0, %v2216_v27 }
 0x3f5   :  { %2219 = vrcp.f32 %v1014_v28 }
 0x400   :  { %v2218_v31 = vpop.eup %2217 }
 0x401   :  { %v1018_v32 = vmul.f32 %v2218_v31, %v1017_v29 }
 0x402   :  { %v2220_v35 = vpop.eup %2219 }
 0x403   :  { %v1019_v34 = vadd.f32 %v1018_v32, %v3391_v33  ;;  %v1021_v37 = vsub.f32 1.0, %v2220_v35  ;;  %v1023_v40 = vmul.f32 %v2220_v35, %v2910_v42  ;;  %v3090_v42 = vld [vmem:[#allocation2 + $0x60] sm:$0xff]  ;;  %v3396_v32 = vld [vmem:[#allocation31_spill] sm:$0xff] }
 0x405   :  { %2221 = vtanh.f32 %v1019_v34 }
 0x412   :  { %v2222_v38 = vpop.eup %2221 }
 0x413   :  { %v1022_v39 = vmul.f32 %v2222_v38, %v1021_v37 }
 0x415   :  { %v2989_v41 = vadd.f32 %v1023_v40, %v1022_v39 }
 0x417   :  { %1025 = vst [vmem:[#allocation5 + $0x18] sm:$0xff] %v2989_v41  ;;  %1091 = vmatmul.mubr.f32.vlgmr.msra.gmra.mxu0 %v2989_v41  ;;  %2067 = vmatmul.mubr.f32.vlgmr.msra.gmra.mxu1 %v2989_v41 }
 0x418   :  { %1191 = vmatpush1.msra.mxu0 %v2994_v43  ;;  %2070 = vmatpush3.msra.mxu1 %v2997_v44 }
 0x419   :  { %1192 = vmatprep.subr.mxu0 %v3000_v46  ;;  %2071 = vmatprep.subr.mxu1 %v3368_v47 }
 0x41a   :  { %1193 = vmatpush1.msra.mxu0 %v3004_v2  ;;  %2072 = vmatpush3.msra.mxu1 %v3007_v4 }
 0x41b   :  { %1194 = vmatprep.subr.mxu0 %v3010_v45  ;;  %2073 = vmatprep.subr.mxu1 %v3368_v47 }
 0x41c   :  { %1195 = vmatpush1.msra.mxu0 %v3014_v58  ;;  %2074 = vmatpush3.msra.mxu1 %v3017_v8 }
 0x41d   :  { %1196 = vmatprep.subr.mxu0 %v3020_v17  ;;  %2075 = vmatprep.subr.mxu1 %v3368_v47 }
 0x41e   :  { %1197 = vmatpush1.msra.mxu0 %v3024_v1  ;;  %2076 = vmatpush3.msra.mxu1 %v3027_v24 }
 0x41f   :  { %1198 = vmatprep.subr.mxu0 %v3030_v61  ;;  %2077 = vmatprep.subr.mxu1 %v3368_v47 }
 0x420   :  { %1199 = vmatpush1.msra.mxu0 %v3034_v13  ;;  %2078 = vmatpush3.msra.mxu1 %v2571_v48  ;;  %v3054_v48 = vld [vmem:[#allocation2 + $0xc8] sm:$0xff] }
 0x421   :  { %1200 = vmatprep.subr.mxu0 %v3038_v3  ;;  %2079 = vmatprep.subr.mxu1 %v3368_v47 }
 0x422   :  { %1201 = vmatpush1.msra.mxu0 %v3042_v36  ;;  %2080 = vmatpush3.msra.mxu1 %v2577_v49  ;;  %v3062_v49 = vld [vmem:[#allocation2 + $0xb0] sm:$0xff] }
 0x423   :  { %1202 = vmatprep.subr.mxu0 %v3046_v30  ;;  %2081 = vmatprep.subr.mxu1 %v3368_v47 }
 0x424   :  { %1203 = vmatpush1.msra.mxu0 %v3050_v63  ;;  %2082 = vmatpush3.msra.mxu1 %v2582_v50  ;;  %v3070_v50 = vld [vmem:[#allocation2 + $0x98] sm:$0xff] }
 0x425   :  { %1204 = vmatprep.subr.mxu0 %v3054_v48  ;;  %2083 = vmatprep.subr.mxu1 %v3368_v47 }
 0x426   :  { %1205 = vmatpush1.msra.mxu0 %v3058_v59  ;;  %2084 = vmatpush3.msra.mxu1 %v2589_v51  ;;  %v3078_v51 = vld [vmem:[#allocation2 + $0x80] sm:$0xff] }
 0x427   :  { %1206 = vmatprep.subr.mxu0 %v3062_v49  ;;  %2085 = vmatprep.subr.mxu1 %v3368_v47 }
 0x428   :  { %1207 = vmatpush1.msra.mxu0 %v3066_v62  ;;  %2086 = vmatpush3.msra.mxu1 %v2597_v52  ;;  %v3086_v52 = vld [vmem:[#allocation2 + $0x68] sm:$0xff] }
 0x429   :  { %1208 = vmatprep.subr.mxu0 %v3070_v50  ;;  %2087 = vmatprep.subr.mxu1 %v3368_v47 }
 0x42a   :  { %1209 = vmatpush1.msra.mxu0 %v3074_v0  ;;  %2088 = vmatpush3.msra.mxu1 %v2603_v53  ;;  %v3094_v53 = vld [vmem:[#allocation2 + $0x50] sm:$0xff] }
 0x42b   :  { %1210 = vmatprep.subr.mxu0 %v3078_v51  ;;  %2089 = vmatprep.subr.mxu1 %v3368_v47 }
 0x42c   :  { %1211 = vmatpush1.msra.mxu0 %v3082_v19  ;;  %2090 = vmatpush3.msra.mxu1 %v2610_v54  ;;  %v3102_v54 = vld [vmem:[#allocation2 + $0x38] sm:$0xff] }
 0x42d   :  { %1212 = vmatprep.subr.mxu0 %v3086_v52  ;;  %2091 = vmatprep.subr.mxu1 %v3368_v47 }
 0x42e   :  { %1213 = vmatpush1.msra.mxu0 %v3090_v42  ;;  %2092 = vmatpush3.msra.mxu1 %v2616_v55  ;;  %v3110_v55 = vld [vmem:[#allocation2 + $0x20] sm:$0xff] }
 0x42f   :  { %1214 = vmatprep.subr.mxu0 %v3094_v53  ;;  %2093 = vmatprep.subr.mxu1 %v3368_v47 }
 0x430   :  { %1215 = vmatpush1.msra.mxu0 %v3098_v6  ;;  %2094 = vmatpush3.msra.mxu1 %v2623_v56  ;;  %v3118_v56 = vld [vmem:[#allocation2 + $0x8] sm:$0xff] }
 0x431   :  { %1216 = vmatprep.subr.mxu0 %v3102_v54  ;;  %2095 = vmatprep.subr.mxu1 %v3368_v47  ;;  %3392 = vst [vmem:[#allocation13_spill] sm:$0xff] %v3118_v56 }
 0x432   :  { %1217 = vmatpush1.msra.mxu0 %v3106_v7  ;;  %2096 = vmatpush3.msra.mxu1 %v2629_v57 }
 0x433   :  { %1218 = vmatprep.subr.mxu0 %v3110_v55  ;;  %2097 = vmatprep.subr.mxu1 %v3368_v47 }
 0x434   :  { %1219 = vmatpush1.msra.mxu0 %v3114_v11  ;;  %2098 = vmatpush3.msra.mxu1 %v3385_v5 }
 0x435   :  { %1220 = vmatprep.subr.mxu0 %v3118_v56  ;;  %2099 = vmatprep.subr.mxu1 %v3368_v47 }
 0x436   :  { %1221 = vmatpush1.msra.mxu0 %v3122_v12  ;;  %1254 = vmatprep.mubr.f32.mxu0 %v3368_v47 }
 0x437   :  { %2100 = vmatpush3.msra.mxu1 %v3388_v9  ;;  %2101 = vmatprep.mubr.msk.f32.mxu1 %vm2360_vm2, %v3368_v47 }
 0x438   :  { %1354 = vmatprep.subr.mxu0 %v2980_v10  ;;  %2104 = vmatprep.subr.mxu1 %v3368_v47 }
 0x4d7   :  { %v1092_v57 = vpop.f32.mrf.mxu0  ;;  %v1163_v5 = vpop.f32.mrf.mxu1 }
 0x4d8   :  { %v1167_v15 = vadd.f32 %v1092_v57, %v3394_v14  ;;  %v1181_v28 = vadd.f32 %v2753_v60, %v1163_v5  ;;  %v3164_v57 = vld [vmem:[#allocation2 + $0x100] sm:$0xff]  ;;  %v3170_v5 = vld [vmem:[#allocation2 + $0xe8] sm:$0xff]  ;;  %v3176_v14 = vld [vmem:[#allocation2 + $0xd0] sm:$0xff] }
 0x4d9   :  { %v2068_v16 = vpop.f32.mrf.mxu1  ;;  %v1094_v20 = vpop.f32.mrf.mxu0 }
 0x4da   :  { %v1727_v18 = vmul.f32 -1.442695, %v1167_v15  ;;  %v1174_v22 = vadd.f32 %v1094_v20, %v3395_v21  ;;  %v3182_v15 = vld [vmem:[#allocation2 + $0xb8] sm:$0xff]  ;;  %v3188_v16 = vld [vmem:[#allocation2 + $0xa0] sm:$0xff]  ;;  %v3200_v20 = vld [vmem:[#allocation2 + $0x70] sm:$0xff] }
 0x4db   :  { %v3206_v21 = vld [vmem:[#allocation2 + $0x58] sm:$0xff] }
 0x4dc   :  { %2223 = vpow2.f32 %v1727_v18  ;;  %v1728_v23 = vmul.f32 -1.442695, %v1174_v22  ;;  %v3194_v18 = vld [vmem:[#allocation2 + $0x88] sm:$0xff]  ;;  %v3212_v22 = vld [vmem:[#allocation2 + $0x40] sm:$0xff] }
 0x4de   :  { %2225 = vpow2.f32 %v1728_v23  ;;  %v3218_v23 = vld [vmem:[#allocation2 + $0x28] sm:$0xff] }
 0x4df   :  { %3397 = vst [vmem:[#allocation19_spill] sm:$0xff] %v3218_v23 }
 0x4e9   :  { %v2224_v9 = vpop.eup %2223 }
 0x4ea   :  { %v1171_v25 = vadd.f32 1.0, %v2224_v9  ;;  %v3225_v9 = vld [vmem:[#allocation2 + $0x10] sm:$0xff] }
 0x4eb   :  { %v2226_v26 = vpop.eup %2225  ;;  %3398 = vst [vmem:[#allocation8_spill] sm:$0xff] %v3225_v9 }
 0x4ec   :  { %2227 = vrcp.f32 %v1171_v25  ;;  %v1178_v27 = vadd.f32 1.0, %v2226_v26 }
 0x4ee   :  { %2229 = vrcp.f32 %v1178_v27  ;;  %v3399_v27 = vld [vmem:[#allocation22_spill] sm:$0xff] }
 0x4f9   :  { %v2228_v29 = vpop.eup %2227 }
 0x4fa   :  { %v1182_v31 = vmul.f32 %v2228_v29, %v1181_v28 }
 0x4fb   :  { %v2230_v34 = vpop.eup %2229 }
 0x4fc   :  { %v1183_v33 = vadd.f32 %v1182_v31, %v3396_v32  ;;  %v1185_v35 = vsub.f32 1.0, %v2230_v34  ;;  %v1187_v39 = vmul.f32 %v2230_v34, %v2989_v41  ;;  %v3158_v41 = vld [vmem:[#allocation2 + $0x118] sm:$0xff] }
 0x4fe   :  { %2231 = vtanh.f32 %v1183_v33  ;;  %v3400_v33 = vld [vmem:[#allocation23_spill] sm:$0xff] }
 0x50b   :  { %v2232_v37 = vpop.eup %2231 }
 0x50c   :  { %v1186_v38 = vmul.f32 %v2232_v37, %v1185_v35 }
 0x50e   :  { %v3136_v40 = vadd.f32 %v1187_v39, %v1186_v38 }
 0x510   :  { %1189 = vst [vmem:[#allocation5 + $0x20] sm:$0xff] %v3136_v40  ;;  %1255 = vmatmul.mubr.f32.vlgmr.msra.gmra.mxu0 %v3136_v40  ;;  %2102 = vmatmul.mubr.f32.vlgmr.msra.gmra.mxu1 %v3136_v40 }
 0x511   :  { %1355 = vmatpush1.msra.mxu0 %v2994_v43  ;;  %2105 = vmatpush3.msra.mxu1 %v2997_v44 }
 0x512   :  { %1356 = vmatprep.subr.mxu0 %v3000_v46  ;;  %2106 = vmatprep.subr.mxu1 %v3368_v47 }
 0x513   :  { %1357 = vmatpush1.msra.mxu0 %v3004_v2  ;;  %2107 = vmatpush3.msra.mxu1 %v3007_v4 }
 0x514   :  { %1358 = vmatprep.subr.mxu0 %v3010_v45  ;;  %2108 = vmatprep.subr.mxu1 %v3368_v47 }
 0x515   :  { %1359 = vmatpush1.msra.mxu0 %v3014_v58  ;;  %2109 = vmatpush3.msra.mxu1 %v3017_v8 }
 0x516   :  { %1360 = vmatprep.subr.mxu0 %v3020_v17  ;;  %2110 = vmatprep.subr.mxu1 %v3368_v47 }
 0x517   :  { %1361 = vmatpush1.msra.mxu0 %v3024_v1  ;;  %2111 = vmatpush3.msra.mxu1 %v3027_v24 }
 0x518   :  { %1362 = vmatprep.subr.mxu0 %v3030_v61  ;;  %2112 = vmatprep.subr.mxu1 %v3368_v47 }
 0x519   :  { %1363 = vmatpush1.msra.mxu0 %v3034_v13  ;;  %2113 = vmatpush3.msra.mxu1 %v3158_v41 }
 0x51a   :  { %1364 = vmatprep.subr.mxu0 %v3038_v3  ;;  %2114 = vmatprep.subr.mxu1 %v3368_v47 }
 0x51b   :  { %1365 = vmatpush1.msra.mxu0 %v3042_v36  ;;  %2115 = vmatpush3.msra.mxu1 %v3164_v57 }
 0x51c   :  { %1366 = vmatprep.subr.mxu0 %v3046_v30  ;;  %2116 = vmatprep.subr.mxu1 %v3368_v47 }
 0x51d   :  { %1367 = vmatpush1.msra.mxu0 %v3050_v63  ;;  %2117 = vmatpush3.msra.mxu1 %v3170_v5 }
 0x51e   :  { %1368 = vmatprep.subr.mxu0 %v3054_v48  ;;  %2118 = vmatprep.subr.mxu1 %v3368_v47 }
 0x51f   :  { %1369 = vmatpush1.msra.mxu0 %v3058_v59  ;;  %2119 = vmatpush3.msra.mxu1 %v3176_v14 }
 0x520   :  { %1370 = vmatprep.subr.mxu0 %v3062_v49  ;;  %2120 = vmatprep.subr.mxu1 %v3368_v47 }
 0x521   :  { %1371 = vmatpush1.msra.mxu0 %v3066_v62  ;;  %2121 = vmatpush3.msra.mxu1 %v3182_v15 }
 0x522   :  { %1372 = vmatprep.subr.mxu0 %v3070_v50  ;;  %2122 = vmatprep.subr.mxu1 %v3368_v47 }
 0x523   :  { %1373 = vmatpush1.msra.mxu0 %v3074_v0  ;;  %2123 = vmatpush3.msra.mxu1 %v3188_v16 }
 0x524   :  { %1374 = vmatprep.subr.mxu0 %v3078_v51  ;;  %2124 = vmatprep.subr.mxu1 %v3368_v47 }
 0x525   :  { %1375 = vmatpush1.msra.mxu0 %v3082_v19  ;;  %2125 = vmatpush3.msra.mxu1 %v3194_v18 }
 0x526   :  { %1376 = vmatprep.subr.mxu0 %v3086_v52  ;;  %2126 = vmatprep.subr.mxu1 %v3368_v47 }
 0x527   :  { %1377 = vmatpush1.msra.mxu0 %v3090_v42  ;;  %2127 = vmatpush3.msra.mxu1 %v3200_v20 }
 0x528   :  { %1378 = vmatprep.subr.mxu0 %v3094_v53  ;;  %2128 = vmatprep.subr.mxu1 %v3368_v47 }
 0x529   :  { %1379 = vmatpush1.msra.mxu0 %v3098_v6  ;;  %2129 = vmatpush3.msra.mxu1 %v3206_v21 }
 0x52a   :  { %1380 = vmatprep.subr.mxu0 %v3102_v54  ;;  %2130 = vmatprep.subr.mxu1 %v3368_v47 }
 0x52b   :  { %1381 = vmatpush1.msra.mxu0 %v3106_v7  ;;  %2131 = vmatpush3.msra.mxu1 %v3212_v22 }
 0x52c   :  { %1382 = vmatprep.subr.mxu0 %v3110_v55  ;;  %2132 = vmatprep.subr.mxu1 %v3368_v47 }
 0x52d   :  { %1383 = vmatpush1.msra.mxu0 %v3114_v11  ;;  %2133 = vmatpush3.msra.mxu1 %v3218_v23  ;;  %v3401_v23 = vld [vmem:[#allocation30_spill] sm:$0xff] }
 0x52e   :  { %1384 = vmatprep.subr.mxu0 %v3118_v56  ;;  %2134 = vmatprep.subr.mxu1 %v3368_v47 }
 0x52f   :  { %1385 = vmatpush1.msra.mxu0 %v3122_v12  ;;  %1418 = vmatprep.mubr.f32.mxu0 %v3368_v47 }
 0x530   :  { %2135 = vmatpush3.msra.mxu1 %v3225_v9  ;;  %2136 = vmatprep.mubr.msk.f32.mxu1 %vm2360_vm2, %v3368_v47 }
 0x531   :  { %1518 = vmatprep.subr.mxu0 %v2980_v10  ;;  %2139 = vmatprep.subr.mxu1 %v3368_v47 }
 0x5d0   :  { %v1256_v25 = vpop.f32.mrf.mxu0  ;;  %v1327_v26 = vpop.f32.mrf.mxu1 }
 0x5d1   :  { %v1331_v28 = vadd.f32 %v1256_v25, %v3399_v27  ;;  %v1345_v10 = vadd.f32 %v2753_v60, %v1327_v26  ;;  %v3402_v60 = vld [vmem:[#allocation19_spill] sm:$0xff] }
 0x5d2   :  { %v2103_v29 = vpop.f32.mrf.mxu1  ;;  %v1258_v32 = vpop.f32.mrf.mxu0 }
 0x5d3   :  { %v1729_v31 = vmul.f32 -1.442695, %v1331_v28  ;;  %v1338_v34 = vadd.f32 %v1258_v32, %v3400_v33 }
 0x5d5   :  { %2233 = vpow2.f32 %v1729_v31  ;;  %v1730_v35 = vmul.f32 -1.442695, %v1338_v34 }
 0x5d7   :  { %2235 = vpow2.f32 %v1730_v35 }
 0x5e2   :  { %v2234_v37 = vpop.eup %2233 }
 0x5e3   :  { %v1335_v38 = vadd.f32 1.0, %v2234_v37 }
 0x5e4   :  { %v2236_v39 = vpop.eup %2235 }
 0x5e5   :  { %2237 = vrcp.f32 %v1335_v38  ;;  %v1342_v9 = vadd.f32 1.0, %v2236_v39 }
 0x5e7   :  { %2239 = vrcp.f32 %v1342_v9 }
 0x5f2   :  { %v2238_v12 = vpop.eup %2237 }
 0x5f3   :  { %v1346_v56 = vmul.f32 %v2238_v12, %v1345_v10 }
 0x5f4   :  { %v2240_v27 = vpop.eup %2239 }
 0x5f5   :  { %v1347_v25 = vadd.f32 %v1346_v56, %v3401_v23  ;;  %v1349_v28 = vsub.f32 1.0, %v2240_v27  ;;  %v1351_v32 = vmul.f32 %v2240_v27, %v3136_v40  ;;  %v3410_v40 = vld [vmem:[#allocation27_spill] sm:$0xff] }
 0x5f7   :  { %2241 = vtanh.f32 %v1347_v25 }
 0x604   :  { %v2242_v29 = vpop.eup %2241 }
 0x605   :  { %v1350_v31 = vmul.f32 %v2242_v29, %v1349_v28 }
 0x607   :  { %v3237_v33 = vadd.f32 %v1351_v32, %v1350_v31 }
 0x609   :  { %1353 = vst [vmem:[#allocation5 + $0x28] sm:$0xff] %v3237_v33  ;;  %1419 = vmatmul.mubr.f32.vlgmr.msra.gmra.mxu0 %v3237_v33  ;;  %2137 = vmatmul.mubr.f32.vlgmr.msra.gmra.mxu1 %v3237_v33 }
 0x60a   :  { %1519 = vmatpush1.msra.mxu0 %v2994_v43  ;;  %2140 = vmatpush3.msra.mxu1 %v2997_v44  ;;  %v3403_v43 = vld [vmem:[#allocation13_spill] sm:$0xff]  ;;  %v3404_v44 = vld [vmem:[#allocation14_spill] sm:$0xff] }
 0x60b   :  { %1520 = vmatprep.subr.mxu0 %v3000_v46  ;;  %2141 = vmatprep.subr.mxu1 %v3368_v47  ;;  %v3405_v46 = vld [vmem:[#allocation8_spill] sm:$0xff] }
 0x60c   :  { %1521 = vmatpush1.msra.mxu0 %v3004_v2  ;;  %2142 = vmatpush3.msra.mxu1 %v3007_v4 }
 0x60d   :  { %1522 = vmatprep.subr.mxu0 %v3010_v45  ;;  %2143 = vmatprep.subr.mxu1 %v3368_v47  ;;  %v3406_v45 = vld [vmem:[#allocation24_spill] sm:$0xff] }
 0x60e   :  { %1523 = vmatpush1.msra.mxu0 %v3014_v58  ;;  %2144 = vmatpush3.msra.mxu1 %v3017_v8 }
 0x60f   :  { %1524 = vmatprep.subr.mxu0 %v3020_v17  ;;  %2145 = vmatprep.subr.mxu1 %v3368_v47 }
 0x610   :  { %1525 = vmatpush1.msra.mxu0 %v3024_v1  ;;  %2146 = vmatpush3.msra.mxu1 %v3027_v24  ;;  %v3407_v24 = vld [vmem:[#allocation25_spill] sm:$0xff] }
 0x611   :  { %1526 = vmatprep.subr.mxu0 %v3030_v61  ;;  %2147 = vmatprep.subr.mxu1 %v3368_v47 }
 0x612   :  { %1527 = vmatpush1.msra.mxu0 %v3034_v13  ;;  %2148 = vmatpush3.msra.mxu1 %v3158_v41 }
 0x613   :  { %1528 = vmatprep.subr.mxu0 %v3038_v3  ;;  %2149 = vmatprep.subr.mxu1 %v3368_v47 }
 0x614   :  { %1529 = vmatpush1.msra.mxu0 %v3042_v36  ;;  %2150 = vmatpush3.msra.mxu1 %v3164_v57 }
 0x615   :  { %1530 = vmatprep.subr.mxu0 %v3046_v30  ;;  %2151 = vmatprep.subr.mxu1 %v3368_v47 }
 0x616   :  { %1531 = vmatpush1.msra.mxu0 %v3050_v63  ;;  %2152 = vmatpush3.msra.mxu1 %v3170_v5 }
 0x617   :  { %1532 = vmatprep.subr.mxu0 %v3054_v48  ;;  %2153 = vmatprep.subr.mxu1 %v3368_v47 }
 0x618   :  { %1533 = vmatpush1.msra.mxu0 %v3058_v59  ;;  %2154 = vmatpush3.msra.mxu1 %v3176_v14 }
 0x619   :  { %1534 = vmatprep.subr.mxu0 %v3062_v49  ;;  %2155 = vmatprep.subr.mxu1 %v3368_v47 }
 0x61a   :  { %1535 = vmatpush1.msra.mxu0 %v3066_v62  ;;  %2156 = vmatpush3.msra.mxu1 %v3182_v15  ;;  %v3408_v62 = vld [vmem:[#allocation33_spill] sm:$0xff] }
 0x61b   :  { %1536 = vmatprep.subr.mxu0 %v3070_v50  ;;  %2157 = vmatprep.subr.mxu1 %v3368_v47 }
 0x61c   :  { %1537 = vmatpush1.msra.mxu0 %v3074_v0  ;;  %2158 = vmatpush3.msra.mxu1 %v3188_v16 }
 0x61d   :  { %1538 = vmatprep.subr.mxu0 %v3078_v51  ;;  %2159 = vmatprep.subr.mxu1 %v3368_v47 }
 0x61e   :  { %1539 = vmatpush1.msra.mxu0 %v3082_v19  ;;  %2160 = vmatpush3.msra.mxu1 %v3194_v18 }
 0x61f   :  { %1540 = vmatprep.subr.mxu0 %v3086_v52  ;;  %2161 = vmatprep.subr.mxu1 %v3368_v47 }
 0x620   :  { %1541 = vmatpush1.msra.mxu0 %v3090_v42  ;;  %2162 = vmatpush3.msra.mxu1 %v3200_v20 }
 0x621   :  { %1542 = vmatprep.subr.mxu0 %v3094_v53  ;;  %2163 = vmatprep.subr.mxu1 %v3368_v47 }
 0x622   :  { %1543 = vmatpush1.msra.mxu0 %v3098_v6  ;;  %2164 = vmatpush3.msra.mxu1 %v3206_v21 }
 0x623   :  { %1544 = vmatprep.subr.mxu0 %v3102_v54  ;;  %2165 = vmatprep.subr.mxu1 %v3368_v47 }
 0x624   :  { %1545 = vmatpush1.msra.mxu0 %v3106_v7  ;;  %2166 = vmatpush3.msra.mxu1 %v3212_v22  ;;  %v3409_v7 = vld [vmem:[#allocation26_spill] sm:$0xff]  ;;  %v3411_v22 = vld [vmem:[#allocation32_spill] sm:$0xff] }
 0x625   :  { %1546 = vmatprep.subr.mxu0 %v3110_v55  ;;  %2167 = vmatprep.subr.mxu1 %v3368_v47 }
 0x626   :  { %1547 = vmatpush1.msra.mxu0 %v3114_v11  ;;  %2168 = vmatpush3.msra.mxu1 %v3402_v60 }
 0x627   :  { %1548 = vmatprep.subr.mxu0 %v3403_v43  ;;  %2169 = vmatprep.subr.mxu1 %v3368_v47 }
 0x628   :  { %1549 = vmatpush1.msra.mxu0 %v3404_v44  ;;  %1582 = vmatprep.mubr.f32.mxu0 %v3368_v47 }
 0x629   :  { %2170 = vmatpush3.msra.mxu1 %v3405_v46  ;;  %2171 = vmatprep.mubr.msk.f32.mxu1 %vm2360_vm2, %v3368_v47  ;;  %v2311_v47 = vld [vmem:[%s3324_s4] ss:$0 sm:$0xff]  ;;  %s2361_s4 = smov [#allocation5]  }
 0x62a   :  { %s1687_s22 = sshll.u32 %s2361_s4, 4  ;;  %s1688_s22 = int_to_ptr.vmem [resolvable:$true] %s1687_s22 }
 0x62b   :  { %s2332_s23 = scalar_lea.vmem %s1688_s22, 1024  ;;  %p2337_p6 = scmp.lt.s32.totalorder %s1688_s22, %s1688_s22 }
 0x62c   :  { %p2333_p5 = scmp.ne.s32.totalorder %s1688_s22, %s2332_s23  ;;  %p2338_p7 = scmp.lt.s32.totalorder %s2332_s23, %s2332_s23 }
 0x62e   :  { %p2339_p8 = por %p2338_p7, %p2337_p6 }
 0x630   :  { %p2340_p9 = pnand %p2339_p8, %p2333_p5 }
 0x6c9   :  { %v1420_v2 = vpop.f32.mrf.mxu0  ;;  %v1491_v4 = vpop.f32.mrf.mxu1 }
 0x6ca   :  { %v1495_v58 = vadd.f32 %v1420_v2, %v3406_v45  ;;  %v1509_v48 = vadd.f32 %v2311_v47, %v1491_v4 }
 0x6cb   :  { %v2138_v8 = vpop.f32.mrf.mxu1  ;;  %v1422_v1 = vpop.f32.mrf.mxu0 }
 0x6cc   :  { %v1731_v17 = vmul.f32 -1.442695, %v1495_v58  ;;  %v1502_v61 = vadd.f32 %v1422_v1, %v3407_v24 }
 0x6ce   :  { %2243 = vpow2.f32 %v1731_v17  ;;  %v1732_v13 = vmul.f32 -1.442695, %v1502_v61 }
 0x6d0   :  { %2245 = vpow2.f32 %v1732_v13 }
 0x6db   :  { %v2244_v3 = vpop.eup %2243 }
 0x6dc   :  { %v1499_v36 = vadd.f32 1.0, %v2244_v3 }
 0x6dd   :  { %v2246_v30 = vpop.eup %2245 }
 0x6de   :  { %2247 = vrcp.f32 %v1499_v36  ;;  %v1506_v63 = vadd.f32 1.0, %v2246_v30 }
 0x6e0   :  { %2249 = vrcp.f32 %v1506_v63 }
 0x6eb   :  { %v2248_v59 = vpop.eup %2247 }
 0x6ec   :  { %v1510_v49 = vmul.f32 %v2248_v59, %v1509_v48 }
 0x6ed   :  { %v2250_v0 = vpop.eup %2249 }
 0x6ee   :  { %v1511_v50 = vadd.f32 %v1510_v49, %v3408_v62  ;;  %v1513_v51 = vsub.f32 1.0, %v2250_v0  ;;  %v1515_v42 = vmul.f32 %v2250_v0, %v3237_v33 }
 0x6f0   :  { %2251 = vtanh.f32 %v1511_v50 }
 0x6fd   :  { %v2252_v19 = vpop.eup %2251 }
 0x6fe   :  { %v1514_v52 = vmul.f32 %v2252_v19, %v1513_v51 }
 0x700   :  { %v1516_v53 = vadd.f32 %v1515_v42, %v1514_v52 }
 0x702   :  { %1517 = vst [vmem:[#allocation5 + $0x30] sm:$0xff] %v1516_v53  ;;  %1583 = vmatmul.mubr.f32.vlgmr.msra.gmra.mxu0 %v1516_v53  ;;  %2172 = vmatmul.mubr.f32.vlgmr.msra.gmra.mxu1 %v1516_v53 }
 0x7c2   :  { %v1584_v6 = vpop.f32.mrf.mxu0  ;;  %v1655_v54 = vpop.f32.mrf.mxu1 }
 0x7c3   :  { %v1659_v55 = vadd.f32 %v1584_v6, %v3409_v7  ;;  %v1673_v18 = vadd.f32 %v2311_v47, %v1655_v54 }
 0x7c4   :  { %v2173_v11 = vpop.f32.mrf.mxu1  ;;  %v1586_v12 = vpop.f32.mrf.mxu0 }
 0x7c5   :  { %v1733_v56 = vmul.f32 -1.442695, %v1659_v55  ;;  %v1666_v41 = vadd.f32 %v1586_v12, %v3410_v40 }
 0x7c7   :  { %2253 = vpow2.f32 %v1733_v56  ;;  %v1734_v57 = vmul.f32 -1.442695, %v1666_v41 }
 0x7c9   :  { %2255 = vpow2.f32 %v1734_v57 }
 0x7d4   :  { %v2254_v5 = vpop.eup %2253 }
 0x7d5   :  { %v1663_v14 = vadd.f32 1.0, %v2254_v5 }
 0x7d6   :  { %v2256_v15 = vpop.eup %2255 }
 0x7d7   :  { %2257 = vrcp.f32 %v1663_v14  ;;  %v1670_v16 = vadd.f32 1.0, %v2256_v15 }
 0x7d9   :  { %2259 = vrcp.f32 %v1670_v16 }
 0x7e4   :  { %v2258_v20 = vpop.eup %2257 }
 0x7e5   :  { %v1674_v21 = vmul.f32 %v2258_v20, %v1673_v18 }
 0x7e6   :  { %v2260_v9 = vpop.eup %2259 }
 0x7e7   :  { %v1675_v23 = vadd.f32 %v1674_v21, %v3411_v22  ;;  %v1677_v26 = vsub.f32 1.0, %v2260_v9  ;;  %v1679_v37 = vmul.f32 %v2260_v9, %v1516_v53 }
 0x7e9   :  { %2261 = vtanh.f32 %v1675_v23 }
 0x7f6   :  { %v2262_v34 = vpop.eup %2261 }
 0x7f7   :  { %v1678_v35 = vmul.f32 %v2262_v34, %v1677_v26 }
 0x7f9   :  { %v1680_v38 = vadd.f32 %v1679_v37, %v1678_v35 }
 0x7fb   :  { %1681 = vst [vmem:[#allocation5 + $0x38] sm:$0xff] %v1680_v38 }
 0x7fc   :  { %2343 = shalt.err (!%p2340_p9)
}
 0x7fd   :  { %s2362_s24 = smov 128   ;;  %s2363_s25 = smov 8  }
 0x7fe   :  { %1693 = dma.vmem_to_hbm [thread:$0]  %s1688_s22, 1024, %s3325_s5, [#allocation4], %s2362_s24, %s2362_s24, %s2363_s25  }
 0x7ff   :  { %2354 = dma.done.wait [#allocation4], 1024  }
 0x800   :  { %2355 = vsyncadd [#allocation4], 4294966272 }
 0x801   :  { %1697 = vsyncpa [#allocation3], 1 }
 0x802   :  { %1698 = vsyncpa [#allocation4], 1 }

</bundles_post_ra>
